<compile_context>
chip_gen: v7x
topology: tpu7x:2x2x1
jax: 0.10.0
libtpu: 0.0.40
codegen_flags: <defaults>
</compile_context>

<pallas_src>
import jax
import jax.numpy as jnp
from jax.experimental import pallas as pl
from jax.experimental.pallas import tpu as pltpu

# ----- hyperparameters (small, consistent with the module's forward) -----
NUM_LAYERS = 2
D_MODEL    = 32
NUM_HEADS  = 4
D_K        = D_MODEL // NUM_HEADS
D_FF       = 64
SEQ_LEN    = 8
BATCH      = 2
EPS        = 1e-6          # LayerNormalization eps
NEG_INF    = -1e9          # masked_fill value used by the reference MHA


def _layernorm(x, gamma, beta):
    # nn.LayerNorm semantics: biased variance over last dim, affine params.  f32 math.
    mu  = jnp.mean(x, axis=-1, keepdims=True)
    var = jnp.mean(jnp.square(x - mu), axis=-1, keepdims=True)
    return (x - mu) * jax.lax.rsqrt(var + EPS) * gamma + beta


def encoder_kernel(x_ref, mask_ref,
                   ln1_g_ref, ln1_b_ref,
                   wqkv_ref, bqkv_ref,
                   wo_ref, bo_ref,
                   ln2_g_ref, ln2_b_ref,
                   w1_ref, b1_ref, w2_ref, b2_ref,
                   lnf_g_ref, lnf_b_ref,
                   out_ref):
    rows = x_ref.shape[0]            # B * SEQ_LEN (whole batch folded into one grid step)
    bb   = rows // SEQ_LEN
    nb   = bb * NUM_HEADS            # batched-head leading dim for attention matmuls
    x    = x_ref[...]                # (rows, D) f32

    # Hoisted additive key-position mask, materialized once at full (nb, L, L) shape.
    # 0 for valid keys, -1e9 for padded keys (matches masked_fill semantics after softmax).
    add_mask = jnp.where(mask_ref[...] > 0.0, 0.0, jnp.float32(NEG_INF))    # (bb, 1, L)
    add_mask = jnp.broadcast_to(add_mask.reshape(bb, 1, 1, SEQ_LEN),
                                (bb, NUM_HEADS, SEQ_LEN, SEQ_LEN))
    add_mask = add_mask.reshape(nb, SEQ_LEN, SEQ_LEN)                        # (nb, L, L)

    def split_heads(m2d):
        # (rows, D) f32 -> (bb*H, L, D_K): lane slices + leading-dim reshapes/concat only
        parts = [m2d[:, h * D_K:(h + 1) * D_K].reshape(bb, 1, SEQ_LEN, D_K)
                 for h in range(NUM_HEADS)]
        return jnp.concatenate(parts, axis=1).reshape(nb, SEQ_LEN, D_K)

    for l in range(NUM_LAYERS):            # static unroll over layers
        # ---- multi-head self-attention sublayer (pre-LN); dropout = identity ----
        x1 = _layernorm(x, ln1_g_ref[l], ln1_b_ref[l])
        # fused Q/K/V projection: one (rows, D) @ (D, 3D) bf16 matmul, f32 accumulate.
        # 1/sqrt(d_k) is already folded into the Q columns of wqkv/bqkv.
        qkv = jnp.dot(x1.astype(jnp.bfloat16), wqkv_ref[l],
                      preferred_element_type=jnp.float32) + bqkv_ref[l]      # (rows, 3D) f32
        q = split_heads(qkv[:, 0 * D_MODEL:1 * D_MODEL]).astype(jnp.bfloat16)  # (nb, L, D_K)
        k = split_heads(qkv[:, 1 * D_MODEL:2 * D_MODEL]).astype(jnp.bfloat16)
        v = split_heads(qkv[:, 2 * D_MODEL:3 * D_MODEL]).astype(jnp.bfloat16)

        # one batched score matmul for all (batch, head) pairs
        s = jnp.einsum("nqd,nkd->nqk", q, k,
                       preferred_element_type=jnp.float32) + add_mask        # (nb, L, L)
        s = s - jnp.max(s, axis=-1, keepdims=True)
        e = jnp.exp(s)
        p = e * pl.reciprocal(jnp.sum(e, axis=-1, keepdims=True), approx=True)
        # one batched p @ v matmul for all (batch, head) pairs
        o = jnp.einsum("nqk,nkd->nqd", p.astype(jnp.bfloat16), v,
                       preferred_element_type=jnp.float32)                   # (nb, L, D_K)

        # merge heads (lane concat) -> single full-width output projection
        o4 = o.reshape(bb, NUM_HEADS, SEQ_LEN, D_K)
        attn = jnp.concatenate(
            [o4[:, h].reshape(rows, D_K) for h in range(NUM_HEADS)], axis=-1)  # (rows, D)
        attn = jnp.dot(attn.astype(jnp.bfloat16), wo_ref[l],
                       preferred_element_type=jnp.float32) + bo_ref[l]
        x = x + attn                        # residual (dropout = identity)

        # ---- feed-forward sublayer (pre-LN); dropout = identity ----
        x2  = _layernorm(x, ln2_g_ref[l], ln2_b_ref[l])
        hid = jnp.maximum(
            jnp.dot(x2.astype(jnp.bfloat16), w1_ref[l],
                    preferred_element_type=jnp.float32) + b1_ref[l], 0.0)
        ff  = jnp.dot(hid.astype(jnp.bfloat16), w2_ref[l],
                      preferred_element_type=jnp.float32) + b2_ref[l]
        x = x + ff                          # residual (dropout = identity)

    # ---- final LayerNormalization ----
    out_ref[...] = _layernorm(x, lnf_g_ref[...], lnf_b_ref[...])


def encoder_forward(x, e_mask, params):
    B, L, D = x.shape
    (ln1g, ln1b, wq, bq, wk, bk, wv, bv, wo, bo,
     ln2g, ln2b, w1, b1, w2, b2, lnfg, lnfb) = params

    scale = jnp.float32(1.0 / (float(D_K) ** 0.5))
    # Fuse Q/K/V weights and fold the 1/sqrt(d_k) scale into the Q third (wrapper-time,
    # amortized outside the hot path).
    wqkv = jnp.concatenate([wq * scale, wk, wv], axis=-1)     # (NL, D, 3D)
    bqkv = jnp.concatenate([bq * scale, bk, bv], axis=-1)     # (NL, 1, 3D)

    # bf16 weights for the MXU; biases and LayerNorm params stay f32 (added after the
    # f32-accumulated matmul / used by f32 VPU math).
    kparams = [ln1g, ln1b,
               wqkv.astype(jnp.bfloat16), bqkv,
               wo.astype(jnp.bfloat16), bo,
               ln2g, ln2b,
               w1.astype(jnp.bfloat16), b1,
               w2.astype(jnp.bfloat16), b2,
               lnfg, lnfb]

    x2d = x.reshape(B * L, D)          # contiguous (rows, D) slab; no in-kernel relayout

    def full_spec(a):
        nd = a.ndim
        return pl.BlockSpec(a.shape, lambda b, _nd=nd: (0,) * _nd)

    in_specs = [
        pl.BlockSpec((B * L, D), lambda b: (0, 0)),      # x rows (whole batch, one step)
        pl.BlockSpec((B, 1, L), lambda b: (0, 0, 0)),    # e_mask
    ] + [full_spec(p) for p in kparams]

    out2d = pl.pallas_call(
        encoder_kernel,
        out_shape=jax.ShapeDtypeStruct((B * L, D), jnp.float32),
        grid=(1,),                                        # single TC step on all gens
        in_specs=in_specs,
        out_specs=pl.BlockSpec((B * L, D), lambda b: (0, 0)),
        compiler_params=pltpu.CompilerParams(dimension_semantics=("arbitrary",)),
    )(x2d, e_mask, *kparams)
    return out2d.reshape(B, L, D)


# ---------------- deterministic parameter initialization ----------------
def init_params():
    keys = iter(jax.random.split(jax.random.PRNGKey(42), 64))

    def rnd(shape, scale=0.05):
        return jax.random.normal(next(keys), shape, jnp.float32) * scale

    NL, D, F = NUM_LAYERS, D_MODEL, D_FF
    params = [
        jnp.ones((NL, 1, D), jnp.float32),   # ln1 gamma
        jnp.zeros((NL, 1, D), jnp.float32),  # ln1 beta
        rnd((NL, D, D)), rnd((NL, 1, D)),    # W_q, b_q
        rnd((NL, D, D)), rnd((NL, 1, D)),    # W_k, b_k
        rnd((NL, D, D)), rnd((NL, 1, D)),    # W_v, b_v
        rnd((NL, D, D)), rnd((NL, 1, D)),    # W_0, b_0
        jnp.ones((NL, 1, D), jnp.float32),   # ln2 gamma
        jnp.zeros((NL, 1, D), jnp.float32),  # ln2 beta
        rnd((NL, D, F)), rnd((NL, 1, F)),    # FFN W_1, b_1
        rnd((NL, F, D)), rnd((NL, 1, D)),    # FFN W_2, b_2
        jnp.ones((1, D), jnp.float32),       # final LN gamma
        jnp.zeros((1, D), jnp.float32),      # final LN beta
    ]
    return params


# ---------------- pure-JAX f32 reference (same math as the PyTorch module) ----------------
def encoder_ref(x, e_mask, params):
    (ln1g, ln1b, wq, bq, wk, bk, wv, bv, wo, bo,
     ln2g, ln2b, w1, b1, w2, b2, lnfg, lnfb) = params

    def ln(v, g, b):
        mu = jnp.mean(v, -1, keepdims=True)
        var = jnp.mean((v - mu) ** 2, -1, keepdims=True)
        return (v - mu) / jnp.sqrt(var + EPS) * g + b

    B, L, D = x.shape
    for l in range(NUM_LAYERS):
        x1 = ln(x, ln1g[l], ln1b[l])
        q = x1 @ wq[l] + bq[l]
        k = x1 @ wk[l] + bk[l]
        v = x1 @ wv[l] + bv[l]
        q = q.reshape(B, L, NUM_HEADS, D_K).transpose(0, 2, 1, 3)
        k = k.reshape(B, L, NUM_HEADS, D_K).transpose(0, 2, 1, 3)
        v = v.reshape(B, L, NUM_HEADS, D_K).transpose(0, 2, 1, 3)
        s = (q @ k.transpose(0, 1, 3, 2)) / jnp.sqrt(jnp.float32(D_K))
        s = jnp.where(e_mask[:, None, :, :] > 0, s, NEG_INF)
        p = jax.nn.softmax(s, axis=-1)
        o = (p @ v).transpose(0, 2, 1, 3).reshape(B, L, D)
        x = x + (o @ wo[l] + bo[l])
        x2 = ln(x, ln2g[l], ln2b[l])
        x = x + (jnp.maximum(x2 @ w1[l] + b1[l], 0.0) @ w2[l] + b2[l])
    return ln(x, lnfg, lnfb)


if __name__ == "__main__":
    key = jax.random.PRNGKey(0)
    kx, _ = jax.random.split(key)
    x = jax.random.normal(kx, (BATCH, SEQ_LEN, D_MODEL), jnp.float32)

    # valid-token mask: batch 0 fully valid, batch 1 has 2 padded positions
    lengths = jnp.array([SEQ_LEN, SEQ_LEN - 2], jnp.int32)
    e_mask = (jnp.arange(SEQ_LEN)[None, :] < lengths[:, None]).astype(jnp.float32)
    e_mask = e_mask.reshape(BATCH, 1, SEQ_LEN)

    params = init_params()

    out = encoder_forward(x, e_mask, params)
    out = jax.block_until_ready(out)

    ref = encoder_ref(x, e_mask, params)
    assert out.shape == (BATCH, SEQ_LEN, D_MODEL)
    assert bool(jnp.all(jnp.isfinite(out)))
    # bf16 MXU operands (f32 accumulate) + approx reciprocal widen numerics slightly vs the
    # pure-f32 reference; observed error is ~1e-3, tolerance kept at 2e-2 for headroom.
    assert bool(jnp.allclose(out, ref, rtol=2e-2, atol=2e-2))

    print("KERNEL_OK")
</pallas_src>

<mosaic_0001>
module attributes {stable_mosaic.version = 11 : i64} {
  func.func @encoder_kernel(%arg0: i32, %arg1: memref<16x32xf32, #tpu.memory_space<vmem>>, %arg2: memref<2x1x8xf32, #tpu.memory_space<vmem>>, %arg3: memref<2x1x32xf32, #tpu.memory_space<vmem>>, %arg4: memref<2x1x32xf32, #tpu.memory_space<vmem>>, %arg5: memref<2x32x96xbf16, #tpu.memory_space<vmem>>, %arg6: memref<2x1x96xf32, #tpu.memory_space<vmem>>, %arg7: memref<2x32x32xbf16, #tpu.memory_space<vmem>>, %arg8: memref<2x1x32xf32, #tpu.memory_space<vmem>>, %arg9: memref<2x1x32xf32, #tpu.memory_space<vmem>>, %arg10: memref<2x1x32xf32, #tpu.memory_space<vmem>>, %arg11: memref<2x32x64xbf16, #tpu.memory_space<vmem>>, %arg12: memref<2x1x64xf32, #tpu.memory_space<vmem>>, %arg13: memref<2x64x32xbf16, #tpu.memory_space<vmem>>, %arg14: memref<2x1x32xf32, #tpu.memory_space<vmem>>, %arg15: memref<1x32xf32, #tpu.memory_space<vmem>>, %arg16: memref<1x32xf32, #tpu.memory_space<vmem>>, %arg17: memref<16x32xf32, #tpu.memory_space<vmem>>) attributes {dimension_semantics = [#tpu.dimension_semantics<arbitrary>], iteration_bounds = array<i64: 1>, scalar_prefetch = 0 : i64, scratch_operands = 0 : i64, tpu.core_type = #tpu.core_type<tc>, window_params = [{pipeline_mode = #tpu.pipeline_mode<synchronous>, transform_indices = @transform_0, window_bounds = array<i64: 16, 32>}, {pipeline_mode = #tpu.pipeline_mode<synchronous>, transform_indices = @transform_1, window_bounds = array<i64: 2, 1, 8>}, {pipeline_mode = #tpu.pipeline_mode<synchronous>, transform_indices = @transform_2, window_bounds = array<i64: 2, 1, 32>}, {pipeline_mode = #tpu.pipeline_mode<synchronous>, transform_indices = @transform_3, window_bounds = array<i64: 2, 1, 32>}, {pipeline_mode = #tpu.pipeline_mode<synchronous>, transform_indices = @transform_4, window_bounds = array<i64: 2, 32, 96>}, {pipeline_mode = #tpu.pipeline_mode<synchronous>, transform_indices = @transform_5, window_bounds = array<i64: 2, 1, 96>}, {pipeline_mode = #tpu.pipeline_mode<synchronous>, transform_indices = @transform_6, window_bounds = array<i64: 2, 32, 32>}, {pipeline_mode = #tpu.pipeline_mode<synchronous>, transform_indices = @transform_7, window_bounds = array<i64: 2, 1, 32>}, {pipeline_mode = #tpu.pipeline_mode<synchronous>, transform_indices = @transform_8, window_bounds = array<i64: 2, 1, 32>}, {pipeline_mode = #tpu.pipeline_mode<synchronous>, transform_indices = @transform_9, window_bounds = array<i64: 2, 1, 32>}, {pipeline_mode = #tpu.pipeline_mode<synchronous>, transform_indices = @transform_10, window_bounds = array<i64: 2, 32, 64>}, {pipeline_mode = #tpu.pipeline_mode<synchronous>, transform_indices = @transform_11, window_bounds = array<i64: 2, 1, 64>}, {pipeline_mode = #tpu.pipeline_mode<synchronous>, transform_indices = @transform_12, window_bounds = array<i64: 2, 64, 32>}, {pipeline_mode = #tpu.pipeline_mode<synchronous>, transform_indices = @transform_13, window_bounds = array<i64: 2, 1, 32>}, {pipeline_mode = #tpu.pipeline_mode<synchronous>, transform_indices = @transform_14, window_bounds = array<i64: 1, 32>}, {pipeline_mode = #tpu.pipeline_mode<synchronous>, transform_indices = @transform_15, window_bounds = array<i64: 1, 32>}, {pipeline_mode = #tpu.pipeline_mode<synchronous>, transform_indices = @transform_16, window_bounds = array<i64: 16, 32>}]} {
    %c0 = arith.constant 0 : index
    %c0_0 = arith.constant 0 : index
    %0 = vector.load %arg1[%c0, %c0_0] : memref<16x32xf32, #tpu.memory_space<vmem>>, vector<16x32xf32>
    %c0_1 = arith.constant 0 : index
    %c0_2 = arith.constant 0 : index
    %c0_3 = arith.constant 0 : index
    %1 = vector.load %arg2[%c0_1, %c0_2, %c0_3] : memref<2x1x8xf32, #tpu.memory_space<vmem>>, vector<2x1x8xf32>
    %cst = arith.constant 0.000000e+00 : f32
    %2 = vector.broadcast %cst : f32 to vector<2x1x8xf32>
    %3 = arith.cmpf ogt, %1, %2 : vector<2x1x8xf32>
    %cst_4 = arith.constant 0.000000e+00 : f32
    %cst_5 = arith.constant -1.000000e+09 : f32
    %4 = vector.broadcast %cst_4 : f32 to vector<2x1x8xf32>
    %5 = vector.broadcast %cst_5 : f32 to vector<2x1x8xf32>
    %6 = arith.select %3, %4, %5 : vector<2x1x8xi1>, vector<2x1x8xf32>
    %7 = vector.shape_cast %6 : vector<2x1x8xf32> to vector<2x1x1x8xf32>
    %8 = vector.shape_cast %7 : vector<2x1x1x8xf32> to vector<2x1x1x8xf32>
    %9 = vector.broadcast %8 : vector<2x1x1x8xf32> to vector<2x4x8x8xf32>
    %10 = vector.shape_cast %9 : vector<2x4x8x8xf32> to vector<8x8x8xf32>
    %c0_6 = arith.constant 0 : index
    %c0_7 = arith.constant 0 : index
    %c0_8 = arith.constant 0 : index
    %11 = vector.load %arg3[%c0_6, %c0_7, %c0_8] : memref<2x1x32xf32, #tpu.memory_space<vmem>>, vector<1x1x32xf32>
    %12 = vector.shape_cast %11 : vector<1x1x32xf32> to vector<1x32xf32>
    %c0_9 = arith.constant 0 : index
    %c0_10 = arith.constant 0 : index
    %c0_11 = arith.constant 0 : index
    %13 = vector.load %arg4[%c0_9, %c0_10, %c0_11] : memref<2x1x32xf32, #tpu.memory_space<vmem>>, vector<1x1x32xf32>
    %14 = vector.shape_cast %13 : vector<1x1x32xf32> to vector<1x32xf32>
    %cst_12 = arith.constant dense<0.000000e+00> : vector<16xf32>
    %15 = vector.multi_reduction <add>, %0, %cst_12 [1] : vector<16x32xf32> to vector<16xf32>
    %16 = vector.shape_cast %15 : vector<16xf32> to vector<16x1xf32>
    %cst_13 = arith.constant 3.200000e+01 : f32
    %17 = vector.broadcast %cst_13 : f32 to vector<16x1xf32>
    %18 = arith.divf %16, %17 : vector<16x1xf32>
    %19 = vector.broadcast %18 : vector<16x1xf32> to vector<16x32xf32>
    %20 = arith.subf %0, %19 : vector<16x32xf32>
    %21 = arith.mulf %20, %20 : vector<16x32xf32>
    %cst_14 = arith.constant dense<0.000000e+00> : vector<16xf32>
    %22 = vector.multi_reduction <add>, %21, %cst_14 [1] : vector<16x32xf32> to vector<16xf32>
    %23 = vector.shape_cast %22 : vector<16xf32> to vector<16x1xf32>
    %cst_15 = arith.constant 3.200000e+01 : f32
    %24 = vector.broadcast %cst_15 : f32 to vector<16x1xf32>
    %25 = arith.divf %23, %24 : vector<16x1xf32>
    %26 = vector.broadcast %18 : vector<16x1xf32> to vector<16x32xf32>
    %27 = arith.subf %0, %26 : vector<16x32xf32>
    %cst_16 = arith.constant 9.99999997E-7 : f32
    %28 = vector.broadcast %cst_16 : f32 to vector<16x1xf32>
    %29 = arith.addf %25, %28 : vector<16x1xf32>
    %30 = math.rsqrt %29 : vector<16x1xf32>
    %31 = vector.broadcast %30 : vector<16x1xf32> to vector<16x32xf32>
    %32 = arith.mulf %27, %31 : vector<16x32xf32>
    %33 = vector.broadcast %12 : vector<1x32xf32> to vector<16x32xf32>
    %34 = arith.mulf %32, %33 : vector<16x32xf32>
    %35 = vector.broadcast %14 : vector<1x32xf32> to vector<16x32xf32>
    %36 = arith.addf %34, %35 : vector<16x32xf32>
    %37 = arith.truncf %36 : vector<16x32xf32> to vector<16x32xbf16>
    %c0_17 = arith.constant 0 : index
    %c0_18 = arith.constant 0 : index
    %c0_19 = arith.constant 0 : index
    %38 = vector.load %arg5[%c0_17, %c0_18, %c0_19] : memref<2x32x96xbf16, #tpu.memory_space<vmem>>, vector<1x32x96xbf16>
    %39 = vector.shape_cast %38 : vector<1x32x96xbf16> to vector<32x96xbf16>
    %cst_20 = arith.constant dense<0.000000e+00> : vector<16x96xf32>
    %40 = tpu.matmul %37, %39, %cst_20 {dimension_numbers = #tpu.dot_dimension_numbers<[1], [0], [0], [1], [0, 0, 1, 1], [], []>} : vector<16x32xbf16>, vector<32x96xbf16>, vector<16x96xf32> -> vector<16x96xf32>
    %c0_21 = arith.constant 0 : index
    %c0_22 = arith.constant 0 : index
    %c0_23 = arith.constant 0 : index
    %41 = vector.load %arg6[%c0_21, %c0_22, %c0_23] : memref<2x1x96xf32, #tpu.memory_space<vmem>>, vector<1x1x96xf32>
    %42 = vector.shape_cast %41 : vector<1x1x96xf32> to vector<1x96xf32>
    %43 = vector.broadcast %42 : vector<1x96xf32> to vector<16x96xf32>
    %44 = arith.addf %40, %43 : vector<16x96xf32>
    %45 = vector.extract_strided_slice %44 {offsets = [0, 0], sizes = [16, 32], strides = [1, 1]} : vector<16x96xf32> to vector<16x32xf32>
    %46 = vector.extract_strided_slice %45 {offsets = [0, 0], sizes = [16, 8], strides = [1, 1]} : vector<16x32xf32> to vector<16x8xf32>
    %47 = vector.shape_cast %46 : vector<16x8xf32> to vector<2x1x8x8xf32>
    %48 = vector.extract_strided_slice %45 {offsets = [0, 8], sizes = [16, 8], strides = [1, 1]} : vector<16x32xf32> to vector<16x8xf32>
    %49 = vector.shape_cast %48 : vector<16x8xf32> to vector<2x1x8x8xf32>
    %50 = vector.extract_strided_slice %45 {offsets = [0, 16], sizes = [16, 8], strides = [1, 1]} : vector<16x32xf32> to vector<16x8xf32>
    %51 = vector.shape_cast %50 : vector<16x8xf32> to vector<2x1x8x8xf32>
    %52 = vector.extract_strided_slice %45 {offsets = [0, 24], sizes = [16, 8], strides = [1, 1]} : vector<16x32xf32> to vector<16x8xf32>
    %53 = vector.shape_cast %52 : vector<16x8xf32> to vector<2x1x8x8xf32>
    %54 = tpu.concatenate %47, %49, %51, %53 in 1 : vector<2x1x8x8xf32>, vector<2x1x8x8xf32>, vector<2x1x8x8xf32>, vector<2x1x8x8xf32> -> vector<2x4x8x8xf32>
    %55 = vector.shape_cast %54 : vector<2x4x8x8xf32> to vector<8x8x8xf32>
    %56 = arith.truncf %55 : vector<8x8x8xf32> to vector<8x8x8xbf16>
    %57 = vector.extract_strided_slice %44 {offsets = [0, 32], sizes = [16, 32], strides = [1, 1]} : vector<16x96xf32> to vector<16x32xf32>
    %58 = vector.extract_strided_slice %57 {offsets = [0, 0], sizes = [16, 8], strides = [1, 1]} : vector<16x32xf32> to vector<16x8xf32>
    %59 = vector.shape_cast %58 : vector<16x8xf32> to vector<2x1x8x8xf32>
    %60 = vector.extract_strided_slice %57 {offsets = [0, 8], sizes = [16, 8], strides = [1, 1]} : vector<16x32xf32> to vector<16x8xf32>
    %61 = vector.shape_cast %60 : vector<16x8xf32> to vector<2x1x8x8xf32>
    %62 = vector.extract_strided_slice %57 {offsets = [0, 16], sizes = [16, 8], strides = [1, 1]} : vector<16x32xf32> to vector<16x8xf32>
    %63 = vector.shape_cast %62 : vector<16x8xf32> to vector<2x1x8x8xf32>
    %64 = vector.extract_strided_slice %57 {offsets = [0, 24], sizes = [16, 8], strides = [1, 1]} : vector<16x32xf32> to vector<16x8xf32>
    %65 = vector.shape_cast %64 : vector<16x8xf32> to vector<2x1x8x8xf32>
    %66 = tpu.concatenate %59, %61, %63, %65 in 1 : vector<2x1x8x8xf32>, vector<2x1x8x8xf32>, vector<2x1x8x8xf32>, vector<2x1x8x8xf32> -> vector<2x4x8x8xf32>
    %67 = vector.shape_cast %66 : vector<2x4x8x8xf32> to vector<8x8x8xf32>
    %68 = arith.truncf %67 : vector<8x8x8xf32> to vector<8x8x8xbf16>
    %69 = vector.extract_strided_slice %44 {offsets = [0, 64], sizes = [16, 32], strides = [1, 1]} : vector<16x96xf32> to vector<16x32xf32>
    %70 = vector.extract_strided_slice %69 {offsets = [0, 0], sizes = [16, 8], strides = [1, 1]} : vector<16x32xf32> to vector<16x8xf32>
    %71 = vector.shape_cast %70 : vector<16x8xf32> to vector<2x1x8x8xf32>
    %72 = vector.extract_strided_slice %69 {offsets = [0, 8], sizes = [16, 8], strides = [1, 1]} : vector<16x32xf32> to vector<16x8xf32>
    %73 = vector.shape_cast %72 : vector<16x8xf32> to vector<2x1x8x8xf32>
    %74 = vector.extract_strided_slice %69 {offsets = [0, 16], sizes = [16, 8], strides = [1, 1]} : vector<16x32xf32> to vector<16x8xf32>
    %75 = vector.shape_cast %74 : vector<16x8xf32> to vector<2x1x8x8xf32>
    %76 = vector.extract_strided_slice %69 {offsets = [0, 24], sizes = [16, 8], strides = [1, 1]} : vector<16x32xf32> to vector<16x8xf32>
    %77 = vector.shape_cast %76 : vector<16x8xf32> to vector<2x1x8x8xf32>
    %78 = tpu.concatenate %71, %73, %75, %77 in 1 : vector<2x1x8x8xf32>, vector<2x1x8x8xf32>, vector<2x1x8x8xf32>, vector<2x1x8x8xf32> -> vector<2x4x8x8xf32>
    %79 = vector.shape_cast %78 : vector<2x4x8x8xf32> to vector<8x8x8xf32>
    %80 = arith.truncf %79 : vector<8x8x8xf32> to vector<8x8x8xbf16>
    "tpu.trace_start"() <{level = 10 : i32, message = "nqd,nkd->nqk"}> : () -> ()
    %cst_24 = arith.constant dense<0.000000e+00> : vector<8x8x8xf32>
    %81 = tpu.matmul %56, %68, %cst_24 {dimension_numbers = #tpu.dot_dimension_numbers<[2], [2], [1], [1], [0, 0, 0, 1, 1, 1], [0], [0]>} : vector<8x8x8xbf16>, vector<8x8x8xbf16>, vector<8x8x8xf32> -> vector<8x8x8xf32>
    "tpu.trace_stop"() : () -> ()
    %82 = arith.addf %81, %10 : vector<8x8x8xf32>
    %cst_25 = arith.constant dense<0xFF800000> : vector<8x8xf32>
    %83 = vector.multi_reduction <maximumf>, %82, %cst_25 [2] : vector<8x8x8xf32> to vector<8x8xf32>
    %84 = vector.shape_cast %83 : vector<8x8xf32> to vector<8x8x1xf32>
    %85 = vector.broadcast %84 : vector<8x8x1xf32> to vector<8x8x8xf32>
    %86 = arith.subf %82, %85 : vector<8x8x8xf32>
    %87 = math.exp %86 : vector<8x8x8xf32>
    %cst_26 = arith.constant dense<0.000000e+00> : vector<8x8xf32>
    %88 = vector.multi_reduction <add>, %87, %cst_26 [2] : vector<8x8x8xf32> to vector<8x8xf32>
    %89 = vector.shape_cast %88 : vector<8x8xf32> to vector<8x8x1xf32>
    %90 = tpu.reciprocal %89 {approx = true} : vector<8x8x1xf32> -> vector<8x8x1xf32>
    %91 = vector.broadcast %90 : vector<8x8x1xf32> to vector<8x8x8xf32>
    %92 = arith.mulf %87, %91 : vector<8x8x8xf32>
    %93 = arith.truncf %92 : vector<8x8x8xf32> to vector<8x8x8xbf16>
    "tpu.trace_start"() <{level = 10 : i32, message = "nqk,nkd->nqd"}> : () -> ()
    %cst_27 = arith.constant dense<0.000000e+00> : vector<8x8x8xf32>
    %94 = tpu.matmul %93, %80, %cst_27 {dimension_numbers = #tpu.dot_dimension_numbers<[2], [1], [1], [2], [0, 0, 0, 1, 1, 2], [0], [0]>} : vector<8x8x8xbf16>, vector<8x8x8xbf16>, vector<8x8x8xf32> -> vector<8x8x8xf32>
    "tpu.trace_stop"() : () -> ()
    %95 = vector.shape_cast %94 : vector<8x8x8xf32> to vector<2x4x8x8xf32>
    %96 = vector.extract_strided_slice %95 {offsets = [0, 0, 0, 0], sizes = [2, 1, 8, 8], strides = [1, 1, 1, 1]} : vector<2x4x8x8xf32> to vector<2x1x8x8xf32>
    %97 = vector.shape_cast %96 : vector<2x1x8x8xf32> to vector<2x8x8xf32>
    %98 = vector.shape_cast %97 : vector<2x8x8xf32> to vector<16x8xf32>
    %99 = vector.extract_strided_slice %95 {offsets = [0, 1, 0, 0], sizes = [2, 1, 8, 8], strides = [1, 1, 1, 1]} : vector<2x4x8x8xf32> to vector<2x1x8x8xf32>
    %100 = vector.shape_cast %99 : vector<2x1x8x8xf32> to vector<2x8x8xf32>
    %101 = vector.shape_cast %100 : vector<2x8x8xf32> to vector<16x8xf32>
    %102 = vector.extract_strided_slice %95 {offsets = [0, 2, 0, 0], sizes = [2, 1, 8, 8], strides = [1, 1, 1, 1]} : vector<2x4x8x8xf32> to vector<2x1x8x8xf32>
    %103 = vector.shape_cast %102 : vector<2x1x8x8xf32> to vector<2x8x8xf32>
    %104 = vector.shape_cast %103 : vector<2x8x8xf32> to vector<16x8xf32>
    %105 = vector.extract_strided_slice %95 {offsets = [0, 3, 0, 0], sizes = [2, 1, 8, 8], strides = [1, 1, 1, 1]} : vector<2x4x8x8xf32> to vector<2x1x8x8xf32>
    %106 = vector.shape_cast %105 : vector<2x1x8x8xf32> to vector<2x8x8xf32>
    %107 = vector.shape_cast %106 : vector<2x8x8xf32> to vector<16x8xf32>
    %108 = tpu.concatenate %98, %101, %104, %107 in 1 : vector<16x8xf32>, vector<16x8xf32>, vector<16x8xf32>, vector<16x8xf32> -> vector<16x32xf32>
    %109 = arith.truncf %108 : vector<16x32xf32> to vector<16x32xbf16>
    %c0_28 = arith.constant 0 : index
    %c0_29 = arith.constant 0 : index
    %c0_30 = arith.constant 0 : index
    %110 = vector.load %arg7[%c0_28, %c0_29, %c0_30] : memref<2x32x32xbf16, #tpu.memory_space<vmem>>, vector<1x32x32xbf16>
    %111 = vector.shape_cast %110 : vector<1x32x32xbf16> to vector<32x32xbf16>
    %cst_31 = arith.constant dense<0.000000e+00> : vector<16x32xf32>
    %112 = tpu.matmul %109, %111, %cst_31 {dimension_numbers = #tpu.dot_dimension_numbers<[1], [0], [0], [1], [0, 0, 1, 1], [], []>} : vector<16x32xbf16>, vector<32x32xbf16>, vector<16x32xf32> -> vector<16x32xf32>
    %c0_32 = arith.constant 0 : index
    %c0_33 = arith.constant 0 : index
    %c0_34 = arith.constant 0 : index
    %113 = vector.load %arg8[%c0_32, %c0_33, %c0_34] : memref<2x1x32xf32, #tpu.memory_space<vmem>>, vector<1x1x32xf32>
    %114 = vector.shape_cast %113 : vector<1x1x32xf32> to vector<1x32xf32>
    %115 = vector.broadcast %114 : vector<1x32xf32> to vector<16x32xf32>
    %116 = arith.addf %112, %115 : vector<16x32xf32>
    %117 = arith.addf %0, %116 : vector<16x32xf32>
    %c0_35 = arith.constant 0 : index
    %c0_36 = arith.constant 0 : index
    %c0_37 = arith.constant 0 : index
    %118 = vector.load %arg9[%c0_35, %c0_36, %c0_37] : memref<2x1x32xf32, #tpu.memory_space<vmem>>, vector<1x1x32xf32>
    %119 = vector.shape_cast %118 : vector<1x1x32xf32> to vector<1x32xf32>
    %c0_38 = arith.constant 0 : index
    %c0_39 = arith.constant 0 : index
    %c0_40 = arith.constant 0 : index
    %120 = vector.load %arg10[%c0_38, %c0_39, %c0_40] : memref<2x1x32xf32, #tpu.memory_space<vmem>>, vector<1x1x32xf32>
    %121 = vector.shape_cast %120 : vector<1x1x32xf32> to vector<1x32xf32>
    %cst_41 = arith.constant dense<0.000000e+00> : vector<16xf32>
    %122 = vector.multi_reduction <add>, %117, %cst_41 [1] : vector<16x32xf32> to vector<16xf32>
    %123 = vector.shape_cast %122 : vector<16xf32> to vector<16x1xf32>
    %cst_42 = arith.constant 3.200000e+01 : f32
    %124 = vector.broadcast %cst_42 : f32 to vector<16x1xf32>
    %125 = arith.divf %123, %124 : vector<16x1xf32>
    %126 = vector.broadcast %125 : vector<16x1xf32> to vector<16x32xf32>
    %127 = arith.subf %117, %126 : vector<16x32xf32>
    %128 = arith.mulf %127, %127 : vector<16x32xf32>
    %cst_43 = arith.constant dense<0.000000e+00> : vector<16xf32>
    %129 = vector.multi_reduction <add>, %128, %cst_43 [1] : vector<16x32xf32> to vector<16xf32>
    %130 = vector.shape_cast %129 : vector<16xf32> to vector<16x1xf32>
    %cst_44 = arith.constant 3.200000e+01 : f32
    %131 = vector.broadcast %cst_44 : f32 to vector<16x1xf32>
    %132 = arith.divf %130, %131 : vector<16x1xf32>
    %133 = vector.broadcast %125 : vector<16x1xf32> to vector<16x32xf32>
    %134 = arith.subf %117, %133 : vector<16x32xf32>
    %cst_45 = arith.constant 9.99999997E-7 : f32
    %135 = vector.broadcast %cst_45 : f32 to vector<16x1xf32>
    %136 = arith.addf %132, %135 : vector<16x1xf32>
    %137 = math.rsqrt %136 : vector<16x1xf32>
    %138 = vector.broadcast %137 : vector<16x1xf32> to vector<16x32xf32>
    %139 = arith.mulf %134, %138 : vector<16x32xf32>
    %140 = vector.broadcast %119 : vector<1x32xf32> to vector<16x32xf32>
    %141 = arith.mulf %139, %140 : vector<16x32xf32>
    %142 = vector.broadcast %121 : vector<1x32xf32> to vector<16x32xf32>
    %143 = arith.addf %141, %142 : vector<16x32xf32>
    %144 = arith.truncf %143 : vector<16x32xf32> to vector<16x32xbf16>
    %c0_46 = arith.constant 0 : index
    %c0_47 = arith.constant 0 : index
    %c0_48 = arith.constant 0 : index
    %145 = vector.load %arg11[%c0_46, %c0_47, %c0_48] : memref<2x32x64xbf16, #tpu.memory_space<vmem>>, vector<1x32x64xbf16>
    %146 = vector.shape_cast %145 : vector<1x32x64xbf16> to vector<32x64xbf16>
    %cst_49 = arith.constant dense<0.000000e+00> : vector<16x64xf32>
    %147 = tpu.matmul %144, %146, %cst_49 {dimension_numbers = #tpu.dot_dimension_numbers<[1], [0], [0], [1], [0, 0, 1, 1], [], []>} : vector<16x32xbf16>, vector<32x64xbf16>, vector<16x64xf32> -> vector<16x64xf32>
    %c0_50 = arith.constant 0 : index
    %c0_51 = arith.constant 0 : index
    %c0_52 = arith.constant 0 : index
    %148 = vector.load %arg12[%c0_50, %c0_51, %c0_52] : memref<2x1x64xf32, #tpu.memory_space<vmem>>, vector<1x1x64xf32>
    %149 = vector.shape_cast %148 : vector<1x1x64xf32> to vector<1x64xf32>
    %150 = vector.broadcast %149 : vector<1x64xf32> to vector<16x64xf32>
    %151 = arith.addf %147, %150 : vector<16x64xf32>
    %cst_53 = arith.constant 0.000000e+00 : f32
    %152 = vector.broadcast %cst_53 : f32 to vector<16x64xf32>
    %153 = arith.maximumf %151, %152 : vector<16x64xf32>
    %154 = arith.truncf %153 : vector<16x64xf32> to vector<16x64xbf16>
    %c0_54 = arith.constant 0 : index
    %c0_55 = arith.constant 0 : index
    %c0_56 = arith.constant 0 : index
    %155 = vector.load %arg13[%c0_54, %c0_55, %c0_56] : memref<2x64x32xbf16, #tpu.memory_space<vmem>>, vector<1x64x32xbf16>
    %156 = vector.shape_cast %155 : vector<1x64x32xbf16> to vector<64x32xbf16>
    %cst_57 = arith.constant dense<0.000000e+00> : vector<16x32xf32>
    %157 = tpu.matmul %154, %156, %cst_57 {dimension_numbers = #tpu.dot_dimension_numbers<[1], [0], [0], [1], [0, 0, 1, 1], [], []>} : vector<16x64xbf16>, vector<64x32xbf16>, vector<16x32xf32> -> vector<16x32xf32>
    %c0_58 = arith.constant 0 : index
    %c0_59 = arith.constant 0 : index
    %c0_60 = arith.constant 0 : index
    %158 = vector.load %arg14[%c0_58, %c0_59, %c0_60] : memref<2x1x32xf32, #tpu.memory_space<vmem>>, vector<1x1x32xf32>
    %159 = vector.shape_cast %158 : vector<1x1x32xf32> to vector<1x32xf32>
    %160 = vector.broadcast %159 : vector<1x32xf32> to vector<16x32xf32>
    %161 = arith.addf %157, %160 : vector<16x32xf32>
    %162 = arith.addf %117, %161 : vector<16x32xf32>
    %c1 = arith.constant 1 : index
    %c0_61 = arith.constant 0 : index
    %c0_62 = arith.constant 0 : index
    %163 = vector.load %arg3[%c1, %c0_61, %c0_62] : memref<2x1x32xf32, #tpu.memory_space<vmem>>, vector<1x1x32xf32>
    %164 = vector.shape_cast %163 : vector<1x1x32xf32> to vector<1x32xf32>
    %c1_63 = arith.constant 1 : index
    %c0_64 = arith.constant 0 : index
    %c0_65 = arith.constant 0 : index
    %165 = vector.load %arg4[%c1_63, %c0_64, %c0_65] : memref<2x1x32xf32, #tpu.memory_space<vmem>>, vector<1x1x32xf32>
    %166 = vector.shape_cast %165 : vector<1x1x32xf32> to vector<1x32xf32>
    %cst_66 = arith.constant dense<0.000000e+00> : vector<16xf32>
    %167 = vector.multi_reduction <add>, %162, %cst_66 [1] : vector<16x32xf32> to vector<16xf32>
    %168 = vector.shape_cast %167 : vector<16xf32> to vector<16x1xf32>
    %cst_67 = arith.constant 3.200000e+01 : f32
    %169 = vector.broadcast %cst_67 : f32 to vector<16x1xf32>
    %170 = arith.divf %168, %169 : vector<16x1xf32>
    %171 = vector.broadcast %170 : vector<16x1xf32> to vector<16x32xf32>
    %172 = arith.subf %162, %171 : vector<16x32xf32>
    %173 = arith.mulf %172, %172 : vector<16x32xf32>
    %cst_68 = arith.constant dense<0.000000e+00> : vector<16xf32>
    %174 = vector.multi_reduction <add>, %173, %cst_68 [1] : vector<16x32xf32> to vector<16xf32>
    %175 = vector.shape_cast %174 : vector<16xf32> to vector<16x1xf32>
    %cst_69 = arith.constant 3.200000e+01 : f32
    %176 = vector.broadcast %cst_69 : f32 to vector<16x1xf32>
    %177 = arith.divf %175, %176 : vector<16x1xf32>
    %178 = vector.broadcast %170 : vector<16x1xf32> to vector<16x32xf32>
    %179 = arith.subf %162, %178 : vector<16x32xf32>
    %cst_70 = arith.constant 9.99999997E-7 : f32
    %180 = vector.broadcast %cst_70 : f32 to vector<16x1xf32>
    %181 = arith.addf %177, %180 : vector<16x1xf32>
    %182 = math.rsqrt %181 : vector<16x1xf32>
    %183 = vector.broadcast %182 : vector<16x1xf32> to vector<16x32xf32>
    %184 = arith.mulf %179, %183 : vector<16x32xf32>
    %185 = vector.broadcast %164 : vector<1x32xf32> to vector<16x32xf32>
    %186 = arith.mulf %184, %185 : vector<16x32xf32>
    %187 = vector.broadcast %166 : vector<1x32xf32> to vector<16x32xf32>
    %188 = arith.addf %186, %187 : vector<16x32xf32>
    %189 = arith.truncf %188 : vector<16x32xf32> to vector<16x32xbf16>
    %c1_71 = arith.constant 1 : index
    %c0_72 = arith.constant 0 : index
    %c0_73 = arith.constant 0 : index
    %190 = vector.load %arg5[%c1_71, %c0_72, %c0_73] : memref<2x32x96xbf16, #tpu.memory_space<vmem>>, vector<1x32x96xbf16>
    %191 = vector.shape_cast %190 : vector<1x32x96xbf16> to vector<32x96xbf16>
    %cst_74 = arith.constant dense<0.000000e+00> : vector<16x96xf32>
    %192 = tpu.matmul %189, %191, %cst_74 {dimension_numbers = #tpu.dot_dimension_numbers<[1], [0], [0], [1], [0, 0, 1, 1], [], []>} : vector<16x32xbf16>, vector<32x96xbf16>, vector<16x96xf32> -> vector<16x96xf32>
    %c1_75 = arith.constant 1 : index
    %c0_76 = arith.constant 0 : index
    %c0_77 = arith.constant 0 : index
    %193 = vector.load %arg6[%c1_75, %c0_76, %c0_77] : memref<2x1x96xf32, #tpu.memory_space<vmem>>, vector<1x1x96xf32>
    %194 = vector.shape_cast %193 : vector<1x1x96xf32> to vector<1x96xf32>
    %195 = vector.broadcast %194 : vector<1x96xf32> to vector<16x96xf32>
    %196 = arith.addf %192, %195 : vector<16x96xf32>
    %197 = vector.extract_strided_slice %196 {offsets = [0, 0], sizes = [16, 32], strides = [1, 1]} : vector<16x96xf32> to vector<16x32xf32>
    %198 = vector.extract_strided_slice %197 {offsets = [0, 0], sizes = [16, 8], strides = [1, 1]} : vector<16x32xf32> to vector<16x8xf32>
    %199 = vector.shape_cast %198 : vector<16x8xf32> to vector<2x1x8x8xf32>
    %200 = vector.extract_strided_slice %197 {offsets = [0, 8], sizes = [16, 8], strides = [1, 1]} : vector<16x32xf32> to vector<16x8xf32>
    %201 = vector.shape_cast %200 : vector<16x8xf32> to vector<2x1x8x8xf32>
    %202 = vector.extract_strided_slice %197 {offsets = [0, 16], sizes = [16, 8], strides = [1, 1]} : vector<16x32xf32> to vector<16x8xf32>
    %203 = vector.shape_cast %202 : vector<16x8xf32> to vector<2x1x8x8xf32>
    %204 = vector.extract_strided_slice %197 {offsets = [0, 24], sizes = [16, 8], strides = [1, 1]} : vector<16x32xf32> to vector<16x8xf32>
    %205 = vector.shape_cast %204 : vector<16x8xf32> to vector<2x1x8x8xf32>
    %206 = tpu.concatenate %199, %201, %203, %205 in 1 : vector<2x1x8x8xf32>, vector<2x1x8x8xf32>, vector<2x1x8x8xf32>, vector<2x1x8x8xf32> -> vector<2x4x8x8xf32>
    %207 = vector.shape_cast %206 : vector<2x4x8x8xf32> to vector<8x8x8xf32>
    %208 = arith.truncf %207 : vector<8x8x8xf32> to vector<8x8x8xbf16>
    %209 = vector.extract_strided_slice %196 {offsets = [0, 32], sizes = [16, 32], strides = [1, 1]} : vector<16x96xf32> to vector<16x32xf32>
    %210 = vector.extract_strided_slice %209 {offsets = [0, 0], sizes = [16, 8], strides = [1, 1]} : vector<16x32xf32> to vector<16x8xf32>
    %211 = vector.shape_cast %210 : vector<16x8xf32> to vector<2x1x8x8xf32>
    %212 = vector.extract_strided_slice %209 {offsets = [0, 8], sizes = [16, 8], strides = [1, 1]} : vector<16x32xf32> to vector<16x8xf32>
    %213 = vector.shape_cast %212 : vector<16x8xf32> to vector<2x1x8x8xf32>
    %214 = vector.extract_strided_slice %209 {offsets = [0, 16], sizes = [16, 8], strides = [1, 1]} : vector<16x32xf32> to vector<16x8xf32>
    %215 = vector.shape_cast %214 : vector<16x8xf32> to vector<2x1x8x8xf32>
    %216 = vector.extract_strided_slice %209 {offsets = [0, 24], sizes = [16, 8], strides = [1, 1]} : vector<16x32xf32> to vector<16x8xf32>
    %217 = vector.shape_cast %216 : vector<16x8xf32> to vector<2x1x8x8xf32>
    %218 = tpu.concatenate %211, %213, %215, %217 in 1 : vector<2x1x8x8xf32>, vector<2x1x8x8xf32>, vector<2x1x8x8xf32>, vector<2x1x8x8xf32> -> vector<2x4x8x8xf32>
    %219 = vector.shape_cast %218 : vector<2x4x8x8xf32> to vector<8x8x8xf32>
    %220 = arith.truncf %219 : vector<8x8x8xf32> to vector<8x8x8xbf16>
    %221 = vector.extract_strided_slice %196 {offsets = [0, 64], sizes = [16, 32], strides = [1, 1]} : vector<16x96xf32> to vector<16x32xf32>
    %222 = vector.extract_strided_slice %221 {offsets = [0, 0], sizes = [16, 8], strides = [1, 1]} : vector<16x32xf32> to vector<16x8xf32>
    %223 = vector.shape_cast %222 : vector<16x8xf32> to vector<2x1x8x8xf32>
    %224 = vector.extract_strided_slice %221 {offsets = [0, 8], sizes = [16, 8], strides = [1, 1]} : vector<16x32xf32> to vector<16x8xf32>
    %225 = vector.shape_cast %224 : vector<16x8xf32> to vector<2x1x8x8xf32>
    %226 = vector.extract_strided_slice %221 {offsets = [0, 16], sizes = [16, 8], strides = [1, 1]} : vector<16x32xf32> to vector<16x8xf32>
    %227 = vector.shape_cast %226 : vector<16x8xf32> to vector<2x1x8x8xf32>
    %228 = vector.extract_strided_slice %221 {offsets = [0, 24], sizes = [16, 8], strides = [1, 1]} : vector<16x32xf32> to vector<16x8xf32>
    %229 = vector.shape_cast %228 : vector<16x8xf32> to vector<2x1x8x8xf32>
    %230 = tpu.concatenate %223, %225, %227, %229 in 1 : vector<2x1x8x8xf32>, vector<2x1x8x8xf32>, vector<2x1x8x8xf32>, vector<2x1x8x8xf32> -> vector<2x4x8x8xf32>
    %231 = vector.shape_cast %230 : vector<2x4x8x8xf32> to vector<8x8x8xf32>
    %232 = arith.truncf %231 : vector<8x8x8xf32> to vector<8x8x8xbf16>
    "tpu.trace_start"() <{level = 10 : i32, message = "nqd,nkd->nqk"}> : () -> ()
    %cst_78 = arith.constant dense<0.000000e+00> : vector<8x8x8xf32>
    %233 = tpu.matmul %208, %220, %cst_78 {dimension_numbers = #tpu.dot_dimension_numbers<[2], [2], [1], [1], [0, 0, 0, 1, 1, 1], [0], [0]>} : vector<8x8x8xbf16>, vector<8x8x8xbf16>, vector<8x8x8xf32> -> vector<8x8x8xf32>
    "tpu.trace_stop"() : () -> ()
    %234 = arith.addf %233, %10 : vector<8x8x8xf32>
    %cst_79 = arith.constant dense<0xFF800000> : vector<8x8xf32>
    %235 = vector.multi_reduction <maximumf>, %234, %cst_79 [2] : vector<8x8x8xf32> to vector<8x8xf32>
    %236 = vector.shape_cast %235 : vector<8x8xf32> to vector<8x8x1xf32>
    %237 = vector.broadcast %236 : vector<8x8x1xf32> to vector<8x8x8xf32>
    %238 = arith.subf %234, %237 : vector<8x8x8xf32>
    %239 = math.exp %238 : vector<8x8x8xf32>
    %cst_80 = arith.constant dense<0.000000e+00> : vector<8x8xf32>
    %240 = vector.multi_reduction <add>, %239, %cst_80 [2] : vector<8x8x8xf32> to vector<8x8xf32>
    %241 = vector.shape_cast %240 : vector<8x8xf32> to vector<8x8x1xf32>
    %242 = tpu.reciprocal %241 {approx = true} : vector<8x8x1xf32> -> vector<8x8x1xf32>
    %243 = vector.broadcast %242 : vector<8x8x1xf32> to vector<8x8x8xf32>
    %244 = arith.mulf %239, %243 : vector<8x8x8xf32>
    %245 = arith.truncf %244 : vector<8x8x8xf32> to vector<8x8x8xbf16>
    "tpu.trace_start"() <{level = 10 : i32, message = "nqk,nkd->nqd"}> : () -> ()
    %cst_81 = arith.constant dense<0.000000e+00> : vector<8x8x8xf32>
    %246 = tpu.matmul %245, %232, %cst_81 {dimension_numbers = #tpu.dot_dimension_numbers<[2], [1], [1], [2], [0, 0, 0, 1, 1, 2], [0], [0]>} : vector<8x8x8xbf16>, vector<8x8x8xbf16>, vector<8x8x8xf32> -> vector<8x8x8xf32>
    "tpu.trace_stop"() : () -> ()
    %247 = vector.shape_cast %246 : vector<8x8x8xf32> to vector<2x4x8x8xf32>
    %248 = vector.extract_strided_slice %247 {offsets = [0, 0, 0, 0], sizes = [2, 1, 8, 8], strides = [1, 1, 1, 1]} : vector<2x4x8x8xf32> to vector<2x1x8x8xf32>
    %249 = vector.shape_cast %248 : vector<2x1x8x8xf32> to vector<2x8x8xf32>
    %250 = vector.shape_cast %249 : vector<2x8x8xf32> to vector<16x8xf32>
    %251 = vector.extract_strided_slice %247 {offsets = [0, 1, 0, 0], sizes = [2, 1, 8, 8], strides = [1, 1, 1, 1]} : vector<2x4x8x8xf32> to vector<2x1x8x8xf32>
    %252 = vector.shape_cast %251 : vector<2x1x8x8xf32> to vector<2x8x8xf32>
    %253 = vector.shape_cast %252 : vector<2x8x8xf32> to vector<16x8xf32>
    %254 = vector.extract_strided_slice %247 {offsets = [0, 2, 0, 0], sizes = [2, 1, 8, 8], strides = [1, 1, 1, 1]} : vector<2x4x8x8xf32> to vector<2x1x8x8xf32>
    %255 = vector.shape_cast %254 : vector<2x1x8x8xf32> to vector<2x8x8xf32>
    %256 = vector.shape_cast %255 : vector<2x8x8xf32> to vector<16x8xf32>
    %257 = vector.extract_strided_slice %247 {offsets = [0, 3, 0, 0], sizes = [2, 1, 8, 8], strides = [1, 1, 1, 1]} : vector<2x4x8x8xf32> to vector<2x1x8x8xf32>
    %258 = vector.shape_cast %257 : vector<2x1x8x8xf32> to vector<2x8x8xf32>
    %259 = vector.shape_cast %258 : vector<2x8x8xf32> to vector<16x8xf32>
    %260 = tpu.concatenate %250, %253, %256, %259 in 1 : vector<16x8xf32>, vector<16x8xf32>, vector<16x8xf32>, vector<16x8xf32> -> vector<16x32xf32>
    %261 = arith.truncf %260 : vector<16x32xf32> to vector<16x32xbf16>
    %c1_82 = arith.constant 1 : index
    %c0_83 = arith.constant 0 : index
    %c0_84 = arith.constant 0 : index
    %262 = vector.load %arg7[%c1_82, %c0_83, %c0_84] : memref<2x32x32xbf16, #tpu.memory_space<vmem>>, vector<1x32x32xbf16>
    %263 = vector.shape_cast %262 : vector<1x32x32xbf16> to vector<32x32xbf16>
    %cst_85 = arith.constant dense<0.000000e+00> : vector<16x32xf32>
    %264 = tpu.matmul %261, %263, %cst_85 {dimension_numbers = #tpu.dot_dimension_numbers<[1], [0], [0], [1], [0, 0, 1, 1], [], []>} : vector<16x32xbf16>, vector<32x32xbf16>, vector<16x32xf32> -> vector<16x32xf32>
    %c1_86 = arith.constant 1 : index
    %c0_87 = arith.constant 0 : index
    %c0_88 = arith.constant 0 : index
    %265 = vector.load %arg8[%c1_86, %c0_87, %c0_88] : memref<2x1x32xf32, #tpu.memory_space<vmem>>, vector<1x1x32xf32>
    %266 = vector.shape_cast %265 : vector<1x1x32xf32> to vector<1x32xf32>
    %267 = vector.broadcast %266 : vector<1x32xf32> to vector<16x32xf32>
    %268 = arith.addf %264, %267 : vector<16x32xf32>
    %269 = arith.addf %162, %268 : vector<16x32xf32>
    %c1_89 = arith.constant 1 : index
    %c0_90 = arith.constant 0 : index
    %c0_91 = arith.constant 0 : index
    %270 = vector.load %arg9[%c1_89, %c0_90, %c0_91] : memref<2x1x32xf32, #tpu.memory_space<vmem>>, vector<1x1x32xf32>
    %271 = vector.shape_cast %270 : vector<1x1x32xf32> to vector<1x32xf32>
    %c1_92 = arith.constant 1 : index
    %c0_93 = arith.constant 0 : index
    %c0_94 = arith.constant 0 : index
    %272 = vector.load %arg10[%c1_92, %c0_93, %c0_94] : memref<2x1x32xf32, #tpu.memory_space<vmem>>, vector<1x1x32xf32>
    %273 = vector.shape_cast %272 : vector<1x1x32xf32> to vector<1x32xf32>
    %cst_95 = arith.constant dense<0.000000e+00> : vector<16xf32>
    %274 = vector.multi_reduction <add>, %269, %cst_95 [1] : vector<16x32xf32> to vector<16xf32>
    %275 = vector.shape_cast %274 : vector<16xf32> to vector<16x1xf32>
    %cst_96 = arith.constant 3.200000e+01 : f32
    %276 = vector.broadcast %cst_96 : f32 to vector<16x1xf32>
    %277 = arith.divf %275, %276 : vector<16x1xf32>
    %278 = vector.broadcast %277 : vector<16x1xf32> to vector<16x32xf32>
    %279 = arith.subf %269, %278 : vector<16x32xf32>
    %280 = arith.mulf %279, %279 : vector<16x32xf32>
    %cst_97 = arith.constant dense<0.000000e+00> : vector<16xf32>
    %281 = vector.multi_reduction <add>, %280, %cst_97 [1] : vector<16x32xf32> to vector<16xf32>
    %282 = vector.shape_cast %281 : vector<16xf32> to vector<16x1xf32>
    %cst_98 = arith.constant 3.200000e+01 : f32
    %283 = vector.broadcast %cst_98 : f32 to vector<16x1xf32>
    %284 = arith.divf %282, %283 : vector<16x1xf32>
    %285 = vector.broadcast %277 : vector<16x1xf32> to vector<16x32xf32>
    %286 = arith.subf %269, %285 : vector<16x32xf32>
    %cst_99 = arith.constant 9.99999997E-7 : f32
    %287 = vector.broadcast %cst_99 : f32 to vector<16x1xf32>
    %288 = arith.addf %284, %287 : vector<16x1xf32>
    %289 = math.rsqrt %288 : vector<16x1xf32>
    %290 = vector.broadcast %289 : vector<16x1xf32> to vector<16x32xf32>
    %291 = arith.mulf %286, %290 : vector<16x32xf32>
    %292 = vector.broadcast %271 : vector<1x32xf32> to vector<16x32xf32>
    %293 = arith.mulf %291, %292 : vector<16x32xf32>
    %294 = vector.broadcast %273 : vector<1x32xf32> to vector<16x32xf32>
    %295 = arith.addf %293, %294 : vector<16x32xf32>
    %296 = arith.truncf %295 : vector<16x32xf32> to vector<16x32xbf16>
    %c1_100 = arith.constant 1 : index
    %c0_101 = arith.constant 0 : index
    %c0_102 = arith.constant 0 : index
    %297 = vector.load %arg11[%c1_100, %c0_101, %c0_102] : memref<2x32x64xbf16, #tpu.memory_space<vmem>>, vector<1x32x64xbf16>
    %298 = vector.shape_cast %297 : vector<1x32x64xbf16> to vector<32x64xbf16>
    %cst_103 = arith.constant dense<0.000000e+00> : vector<16x64xf32>
    %299 = tpu.matmul %296, %298, %cst_103 {dimension_numbers = #tpu.dot_dimension_numbers<[1], [0], [0], [1], [0, 0, 1, 1], [], []>} : vector<16x32xbf16>, vector<32x64xbf16>, vector<16x64xf32> -> vector<16x64xf32>
    %c1_104 = arith.constant 1 : index
    %c0_105 = arith.constant 0 : index
    %c0_106 = arith.constant 0 : index
    %300 = vector.load %arg12[%c1_104, %c0_105, %c0_106] : memref<2x1x64xf32, #tpu.memory_space<vmem>>, vector<1x1x64xf32>
    %301 = vector.shape_cast %300 : vector<1x1x64xf32> to vector<1x64xf32>
    %302 = vector.broadcast %301 : vector<1x64xf32> to vector<16x64xf32>
    %303 = arith.addf %299, %302 : vector<16x64xf32>
    %cst_107 = arith.constant 0.000000e+00 : f32
    %304 = vector.broadcast %cst_107 : f32 to vector<16x64xf32>
    %305 = arith.maximumf %303, %304 : vector<16x64xf32>
    %306 = arith.truncf %305 : vector<16x64xf32> to vector<16x64xbf16>
    %c1_108 = arith.constant 1 : index
    %c0_109 = arith.constant 0 : index
    %c0_110 = arith.constant 0 : index
    %307 = vector.load %arg13[%c1_108, %c0_109, %c0_110] : memref<2x64x32xbf16, #tpu.memory_space<vmem>>, vector<1x64x32xbf16>
    %308 = vector.shape_cast %307 : vector<1x64x32xbf16> to vector<64x32xbf16>
    %cst_111 = arith.constant dense<0.000000e+00> : vector<16x32xf32>
    %309 = tpu.matmul %306, %308, %cst_111 {dimension_numbers = #tpu.dot_dimension_numbers<[1], [0], [0], [1], [0, 0, 1, 1], [], []>} : vector<16x64xbf16>, vector<64x32xbf16>, vector<16x32xf32> -> vector<16x32xf32>
    %c1_112 = arith.constant 1 : index
    %c0_113 = arith.constant 0 : index
    %c0_114 = arith.constant 0 : index
    %310 = vector.load %arg14[%c1_112, %c0_113, %c0_114] : memref<2x1x32xf32, #tpu.memory_space<vmem>>, vector<1x1x32xf32>
    %311 = vector.shape_cast %310 : vector<1x1x32xf32> to vector<1x32xf32>
    %312 = vector.broadcast %311 : vector<1x32xf32> to vector<16x32xf32>
    %313 = arith.addf %309, %312 : vector<16x32xf32>
    %314 = arith.addf %269, %313 : vector<16x32xf32>
    %c0_115 = arith.constant 0 : index
    %c0_116 = arith.constant 0 : index
    %315 = vector.load %arg15[%c0_115, %c0_116] : memref<1x32xf32, #tpu.memory_space<vmem>>, vector<1x32xf32>
    %c0_117 = arith.constant 0 : index
    %c0_118 = arith.constant 0 : index
    %316 = vector.load %arg16[%c0_117, %c0_118] : memref<1x32xf32, #tpu.memory_space<vmem>>, vector<1x32xf32>
    %cst_119 = arith.constant dense<0.000000e+00> : vector<16xf32>
    %317 = vector.multi_reduction <add>, %314, %cst_119 [1] : vector<16x32xf32> to vector<16xf32>
    %318 = vector.shape_cast %317 : vector<16xf32> to vector<16x1xf32>
    %cst_120 = arith.constant 3.200000e+01 : f32
    %319 = vector.broadcast %cst_120 : f32 to vector<16x1xf32>
    %320 = arith.divf %318, %319 : vector<16x1xf32>
    %321 = vector.broadcast %320 : vector<16x1xf32> to vector<16x32xf32>
    %322 = arith.subf %314, %321 : vector<16x32xf32>
    %323 = arith.mulf %322, %322 : vector<16x32xf32>
    %cst_121 = arith.constant dense<0.000000e+00> : vector<16xf32>
    %324 = vector.multi_reduction <add>, %323, %cst_121 [1] : vector<16x32xf32> to vector<16xf32>
    %325 = vector.shape_cast %324 : vector<16xf32> to vector<16x1xf32>
    %cst_122 = arith.constant 3.200000e+01 : f32
    %326 = vector.broadcast %cst_122 : f32 to vector<16x1xf32>
    %327 = arith.divf %325, %326 : vector<16x1xf32>
    %328 = vector.broadcast %320 : vector<16x1xf32> to vector<16x32xf32>
    %329 = arith.subf %314, %328 : vector<16x32xf32>
    %cst_123 = arith.constant 9.99999997E-7 : f32
    %330 = vector.broadcast %cst_123 : f32 to vector<16x1xf32>
    %331 = arith.addf %327, %330 : vector<16x1xf32>
    %332 = math.rsqrt %331 : vector<16x1xf32>
    %333 = vector.broadcast %332 : vector<16x1xf32> to vector<16x32xf32>
    %334 = arith.mulf %329, %333 : vector<16x32xf32>
    %335 = vector.broadcast %315 : vector<1x32xf32> to vector<16x32xf32>
    %336 = arith.mulf %334, %335 : vector<16x32xf32>
    %337 = vector.broadcast %316 : vector<1x32xf32> to vector<16x32xf32>
    %338 = arith.addf %336, %337 : vector<16x32xf32>
    %c0_124 = arith.constant 0 : index
    %c0_125 = arith.constant 0 : index
    %339 = vector.load %arg17[%c0_124, %c0_125] : memref<16x32xf32, #tpu.memory_space<vmem>>, vector<16x32xf32>
    tpu.vector_store %arg17[%c0_124, %c0_125], %338 {strides = array<i32>} : memref<16x32xf32, #tpu.memory_space<vmem>>, vector<16x32xf32>,
    return
  }
  func.func @transform_0(%arg0: i32) -> (i32, i32) {
    %c0_i32 = arith.constant 0 : i32
    %c0_i32_0 = arith.constant 0 : i32
    %c0_i32_1 = arith.constant 0 : i32
    return %c0_i32, %c0_i32_0 : i32, i32
  }
  func.func @transform_1(%arg0: i32) -> (i32, i32, i32) {
    %c0_i32 = arith.constant 0 : i32
    %c0_i32_0 = arith.constant 0 : i32
    %c0_i32_1 = arith.constant 0 : i32
    %c0_i32_2 = arith.constant 0 : i32
    return %c0_i32, %c0_i32_0, %c0_i32_1 : i32, i32, i32
  }
  func.func @transform_2(%arg0: i32) -> (i32, i32, i32) {
    %c0_i32 = arith.constant 0 : i32
    %c0_i32_0 = arith.constant 0 : i32
    %c0_i32_1 = arith.constant 0 : i32
    %c0_i32_2 = arith.constant 0 : i32
    return %c0_i32, %c0_i32_0, %c0_i32_1 : i32, i32, i32
  }
  func.func @transform_3(%arg0: i32) -> (i32, i32, i32) {
    %c0_i32 = arith.constant 0 : i32
    %c0_i32_0 = arith.constant 0 : i32
    %c0_i32_1 = arith.constant 0 : i32
    %c0_i32_2 = arith.constant 0 : i32
    return %c0_i32, %c0_i32_0, %c0_i32_1 : i32, i32, i32
  }
  func.func @transform_4(%arg0: i32) -> (i32, i32, i32) {
    %c0_i32 = arith.constant 0 : i32
    %c0_i32_0 = arith.constant 0 : i32
    %c0_i32_1 = arith.constant 0 : i32
    %c0_i32_2 = arith.constant 0 : i32
    return %c0_i32, %c0_i32_0, %c0_i32_1 : i32, i32, i32
  }
  func.func @transform_5(%arg0: i32) -> (i32, i32, i32) {
    %c0_i32 = arith.constant 0 : i32
    %c0_i32_0 = arith.constant 0 : i32
    %c0_i32_1 = arith.constant 0 : i32
    %c0_i32_2 = arith.constant 0 : i32
    return %c0_i32, %c0_i32_0, %c0_i32_1 : i32, i32, i32
  }
  func.func @transform_6(%arg0: i32) -> (i32, i32, i32) {
    %c0_i32 = arith.constant 0 : i32
    %c0_i32_0 = arith.constant 0 : i32
    %c0_i32_1 = arith.constant 0 : i32
    %c0_i32_2 = arith.constant 0 : i32
    return %c0_i32, %c0_i32_0, %c0_i32_1 : i32, i32, i32
  }
  func.func @transform_7(%arg0: i32) -> (i32, i32, i32) {
    %c0_i32 = arith.constant 0 : i32
    %c0_i32_0 = arith.constant 0 : i32
    %c0_i32_1 = arith.constant 0 : i32
    %c0_i32_2 = arith.constant 0 : i32
    return %c0_i32, %c0_i32_0, %c0_i32_1 : i32, i32, i32
  }
  func.func @transform_8(%arg0: i32) -> (i32, i32, i32) {
    %c0_i32 = arith.constant 0 : i32
    %c0_i32_0 = arith.constant 0 : i32
    %c0_i32_1 = arith.constant 0 : i32
    %c0_i32_2 = arith.constant 0 : i32
    return %c0_i32, %c0_i32_0, %c0_i32_1 : i32, i32, i32
  }
  func.func @transform_9(%arg0: i32) -> (i32, i32, i32) {
    %c0_i32 = arith.constant 0 : i32
    %c0_i32_0 = arith.constant 0 : i32
    %c0_i32_1 = arith.constant 0 : i32
    %c0_i32_2 = arith.constant 0 : i32
    return %c0_i32, %c0_i32_0, %c0_i32_1 : i32, i32, i32
  }
  func.func @transform_10(%arg0: i32) -> (i32, i32, i32) {
    %c0_i32 = arith.constant 0 : i32
    %c0_i32_0 = arith.constant 0 : i32
    %c0_i32_1 = arith.constant 0 : i32
    %c0_i32_2 = arith.constant 0 : i32
    return %c0_i32, %c0_i32_0, %c0_i32_1 : i32, i32, i32
  }
  func.func @transform_11(%arg0: i32) -> (i32, i32, i32) {
    %c0_i32 = arith.constant 0 : i32
    %c0_i32_0 = arith.constant 0 : i32
    %c0_i32_1 = arith.constant 0 : i32
    %c0_i32_2 = arith.constant 0 : i32
    return %c0_i32, %c0_i32_0, %c0_i32_1 : i32, i32, i32
  }
  func.func @transform_12(%arg0: i32) -> (i32, i32, i32) {
    %c0_i32 = arith.constant 0 : i32
    %c0_i32_0 = arith.constant 0 : i32
    %c0_i32_1 = arith.constant 0 : i32
    %c0_i32_2 = arith.constant 0 : i32
    return %c0_i32, %c0_i32_0, %c0_i32_1 : i32, i32, i32
  }
  func.func @transform_13(%arg0: i32) -> (i32, i32, i32) {
    %c0_i32 = arith.constant 0 : i32
    %c0_i32_0 = arith.constant 0 : i32
    %c0_i32_1 = arith.constant 0 : i32
    %c0_i32_2 = arith.constant 0 : i32
    return %c0_i32, %c0_i32_0, %c0_i32_1 : i32, i32, i32
  }
  func.func @transform_14(%arg0: i32) -> (i32, i32) {
    %c0_i32 = arith.constant 0 : i32
    %c0_i32_0 = arith.constant 0 : i32
    %c0_i32_1 = arith.constant 0 : i32
    return %c0_i32, %c0_i32_0 : i32, i32
  }
  func.func @transform_15(%arg0: i32) -> (i32, i32) {
    %c0_i32 = arith.constant 0 : i32
    %c0_i32_0 = arith.constant 0 : i32
    %c0_i32_1 = arith.constant 0 : i32
    return %c0_i32, %c0_i32_0 : i32, i32
  }
  func.func @transform_16(%arg0: i32) -> (i32, i32) {
    %c0_i32 = arith.constant 0 : i32
    %c0_i32_0 = arith.constant 0 : i32
    %c0_i32_1 = arith.constant 0 : i32
    return %c0_i32, %c0_i32_0 : i32, i32
  }
}

</mosaic_0001>

<bundles_post_ra>
// kernel: tpu_custom_call.1
= control target key start
LH: loop header
LB: loop body
LE: loop exit
PB: predicated region body
PF: predicated region fallthrough
CT: control target
= control target key end

     0   :  { %s4345_s0 = inlined_call_operand.hbm [shape: f32[16,32], index: 0, kind: input, shape index: {}]   ;;  %s4346_s1 = inlined_call_operand.vmem [shape: f32[2,1,8], index: 1, kind: input, shape index: {}]   ;;  %s4347_s2 = inlined_call_operand.vmem [shape: f32[2,1,32], index: 2, kind: input, shape index: {}]   ;;  %s4348_s3 = inlined_call_operand.vmem [shape: f32[2,1,32], index: 3, kind: input, shape index: {}]   ;;  %s4349_s4 = inlined_call_operand.vmem [shape: bf16[2,32,96], index: 4, kind: input, shape index: {}]   ;;  %s4350_s5 = inlined_call_operand.vmem [shape: f32[2,1,96], index: 5, kind: input, shape index: {}]   ;;  %s4351_s6 = inlined_call_operand.vmem [shape: bf16[2,32,32], index: 6, kind: input, shape index: {}]   ;;  %s4352_s7 = inlined_call_operand.vmem [shape: f32[2,1,32], index: 7, kind: input, shape index: {}]   ;;  %s4353_s8 = inlined_call_operand.vmem [shape: f32[2,1,32], index: 8, kind: input, shape index: {}]   ;;  %s4354_s9 = inlined_call_operand.hbm [shape: f32[2,1,32], index: 9, kind: input, shape index: {}]   ;;  %s4355_s10 = inlined_call_operand.vmem [shape: bf16[2,32,64], index: 10, kind: input, shape index: {}]   ;;  %s4356_s11 = inlined_call_operand.hbm [shape: f32[2,1,64], index: 11, kind: input, shape index: {}]   ;;  %s4357_s12 = inlined_call_operand.vmem [shape: bf16[2,64,32], index: 12, kind: input, shape index: {}]   ;;  %s4358_s13 = inlined_call_operand.vmem [shape: f32[2,1,32], index: 13, kind: input, shape index: {}]   ;;  %s4359_s14 = inlined_call_operand.vmem [shape: f32[1,32], index: 14, kind: input, shape index: {}]   ;;  %s4360_s15 = inlined_call_operand.vmem [shape: f32[1,32], index: 15, kind: input, shape index: {}]   ;;  %s4361_s16 = inlined_call_operand.hbm [shape: f32[16,32], index: 16, kind: output, shape index: {}]  }
   0x1   :  { %4366 = sst [smem:[#allocation12_spill]] %s4345_s0 }
   0x2   :  { %4367 = sst [smem:[#allocation13_spill]] %s4361_s16 }
   0x3   :  { %21 = vsyncpa [#allocation3], 0 }
   0x4   :  { %22 = vsyncpa [#allocation6], 0 }
   0x5   :  { %23 = vsyncpa [#allocation4], 0  ;;  %s3528_s21 = smov [#allocation5]   ;;  %s3434_s25 = scalar_lea.hbm %s4354_s9, 32 }
   0x6   :  { %s57_s22 = sshll.u32 %s3528_s21, 4  ;;  %p3435_p0 = scmp.ne.s32.totalorder %s4354_s9, %s3434_s25  ;;  %s58_s22 = int_to_ptr.vmem [resolvable:$true] %s57_s22 }
   0x7   :  { %p3438_p1 = scmp.lt.u32.totalorder %s3434_s25, %s4354_s9 }
   0x9   :  { %p3440_p2 = pnand %p3438_p1, %p3435_p0 }
   0xb   :  { %3443 = shalt.err (!%p3440_p2)
}
   0xc   :  { %s3444_s30 = scalar_lea.vmem %s58_s22, 32  ;;  %p3449_p4 = scmp.lt.s32.totalorder %s58_s22, %s58_s22 }
   0xd   :  { %p3445_p3 = scmp.ne.s32.totalorder %s58_s22, %s3444_s30  ;;  %p3450_p5 = scmp.lt.s32.totalorder %s3444_s30, %s3444_s30 }
   0xf   :  { %p3451_p6 = por %p3450_p5, %p3449_p4 }
  0x11   :  { %p3452_p7 = pnand %p3451_p6, %p3445_p3 }
  0x13   :  { %3455 = shalt.err (!%p3452_p7)
}
  0x14   :  { %s4364_s0 = smov 16   ;;  %s3530_s17 = smov 1  }
  0x15   :  { %63 = dma.hbm_to_vmem [thread:$0]  %s4354_s9, 32, %s58_s22, [#allocation6], %s4364_s0, %s4364_s0, %s3530_s17  }
  0x16   :  { %s3531_s20 = smov [#allocation2]   ;;  %s4368_s25 = sld [smem:[#allocation12_spill]] }
  0x17   :  { %s29_s21 = sshll.u32 %s3531_s20, 4  ;;  %s30_s21 = int_to_ptr.vmem [resolvable:$true] %s29_s21 }
  0x1c   :  { %s3456_s26 = scalar_lea.hbm %s4368_s25, 256 }
  0x1d   :  { %p3457_p8 = scmp.ne.s32.totalorder %s4368_s25, %s3456_s26  ;;  %p3460_p9 = scmp.lt.u32.totalorder %s3456_s26, %s4368_s25 }
  0x1f   :  { %p3462_p10 = pnand %p3460_p9, %p3457_p8 }
  0x21   :  { %3465 = shalt.err (!%p3462_p10)
}
  0x22   :  { %s3466_s16 = scalar_lea.vmem %s30_s21, 256  ;;  %p3471_p12 = scmp.lt.s32.totalorder %s30_s21, %s30_s21 }
  0x23   :  { %p3467_p11 = scmp.ne.s32.totalorder %s30_s21, %s3466_s16  ;;  %p3472_p13 = scmp.lt.s32.totalorder %s3466_s16, %s3466_s16 }
  0x25   :  { %p3473_p0 = por %p3472_p13, %p3471_p12 }
  0x27   :  { %p3474_p1 = pnand %p3473_p0, %p3467_p11 }
  0x29   :  { %3477 = shalt.err (!%p3474_p1)
}
  0x2a   :  { %s3532_s9 = smov 128   ;;  %s3533_s22 = smov 8  }
  0x2b   :  { %35 = dma.hbm_to_vmem [thread:$0]  %s4368_s25, 256, %s30_s21, [#allocation3], %s3532_s9, %s3532_s9, %s3533_s22  }
  0x2c   :  { %s3534_s20 = smov [#allocation7]   ;;  %s3478_s27 = scalar_lea.hbm %s4356_s11, 32 }
  0x2d   :  { %s71_s23 = sshll.u32 %s3534_s20, 4  ;;  %p3479_p2 = scmp.ne.s32.totalorder %s4356_s11, %s3478_s27  ;;  %s72_s23 = int_to_ptr.vmem [resolvable:$true] %s71_s23 }
  0x2e   :  { %p3482_p3 = scmp.lt.u32.totalorder %s3478_s27, %s4356_s11 }
  0x30   :  { %p3484_p4 = pnand %p3482_p3, %p3479_p2 }
  0x32   :  { %3487 = shalt.err (!%p3484_p4)
}
  0x33   :  { %s3488_s0 = scalar_lea.vmem %s72_s23, 32  ;;  %p3493_p6 = scmp.lt.s32.totalorder %s72_s23, %s72_s23 }
  0x34   :  { %p3489_p5 = scmp.ne.s32.totalorder %s72_s23, %s3488_s0  ;;  %p3494_p7 = scmp.lt.s32.totalorder %s3488_s0, %s3488_s0 }
  0x36   :  { %p3495_p8 = por %p3494_p7, %p3493_p6 }
  0x38   :  { %p3496_p9 = pnand %p3495_p8, %p3489_p5 }
  0x3a   :  { %3499 = shalt.err (!%p3496_p9)
}
  0x3b   :  { %s4369_s21 = smov 16  }
  0x3c   :  { %77 = dma.hbm_to_vmem [thread:$0]  %s4356_s11, 32, %s72_s23, [#allocation6], %s4369_s21, %s4369_s21, %s3530_s17  }
  0x3d   :  { %3522 = dma.done.wait [#allocation3], 256  }
  0x3e   :  { %3523 = vsyncadd [#allocation3], 4294967040 }
  0x3f   :  { %3524 = dma.done.wait [#allocation6], 64  }
  0x40   :  { %3525 = vsyncadd [#allocation6], 4294967232  ;;  %vm118_vm0 = vcmask 261120   ;;  %v3675_v0 = vld [vmem:[#allocation2] sm:$0xff]  ;;  %v3677_v1 = vld [vmem:[#allocation2 + $0x8] sm:$0xff]  ;;  %v3535_v15 = vmov 0.0  }
  0x41   :  { %v119_v2 = vsel %vm118_vm0, %v3675_v0, 0.0  ;;  %v122_v3 = vsel %vm118_vm0, %v3677_v1, 0.0  ;;  %v3330_v14 = vld [vmem:[%s4349_s4] sm:$0xff]   ;;  %3019 = vmatprep.subr.bf16.mxu1 %v3535_v15  ;;  %vm3536_vm1 = vmmov 0   ;;  %v3331_v16 = vld [vmem:[%s4349_s4 + $0x8] sm:$0xff]   ;;  %3033 = vmatprep.subr.bf16.mxu0 %v3535_v15  ;;  %s3537_s28 = smov 112  }
  0x42   :  { %120 = vadd.xlane.f32.xlu0 %v119_v2  ;;  %3023 = vmatprep.mubr.msk.bf16.mxu1 %vm3536_vm1, %v3535_v15  ;;  %v2823_v25 = vld [vmem:[%s4347_s2] ss:$0 sm:$0xff]  ;;  %s3538_s29 = smov 120   ;;  %s3539_s30 = smov 104   ;;  %vm261_vm2 = vcmask 64512   ;;  %vm752_vm5 = vcmask 1043456  }
  0x43   :  { %3020 = vmatpush3.bf16.msra.mxu1 %v3330_v14  ;;  %3035 = vmatprep.mubr.msk.bf16.mxu0 %vm3536_vm1, %v3535_v15  ;;  %v2824_v29 = vld [vmem:[%s4348_s3] ss:$0 sm:$0xff]  ;;  %s3540_s25 = smov 96   ;;  %s3543_s26 = smov 24   ;;  %vm1158_vm6 = vcmask 130048   ;;  %vm1161_vm7 = vcmask 195584  }
  0x44   :  { %3021 = vmatprep.subr.bf16.mxu1 %v3535_v15  ;;  %v2825_v34 = vld [vmem:[%s4350_s5] ss:$0 sm:$0xff]  ;;  %vm1388_vm8 = vcmask 523264   ;;  %s3544_s19 = smov [#allocation8]  }
  0x46   :  { %123 = vadd.xlane.f32.xlu0 %v122_v3 }
  0x47   :  { %3022 = vmatpush3.bf16.msra.mxu1 %v3331_v16 }
  0x48   :  { %3027 = vmatprep.subr.bf16.mxu1 %v3535_v15 }
  0xcf   :  { %v121_v4 = vpop.xlane.xlu0 %120 }
  0xd0   :  { %v126_v5 = vmul.f32 0.03125, %v121_v4 }
  0xd2   :  { %v128_v6 = vsub.f32 %v3675_v0, %v126_v5 }
  0xd3   :  { %v124_v7 = vpop.xlane.xlu0 %123 }
  0xd4   :  { %v127_v8 = vmul.f32 0.03125, %v124_v7  ;;  %v130_v9 = vmul.f32 %v128_v6, %v128_v6 }
  0xd6   :  { %v129_v10 = vsub.f32 %v3677_v1, %v127_v8  ;;  %v132_v11 = vsel %vm118_vm0, %v130_v9, 0.0  ;;  %v106_v9 = vlaneseq }
  0xd7   :  { %133 = vadd.xlane.f32.xlu1 %v132_v11 }
  0xd8   :  { %v131_v12 = vmul.f32 %v129_v10, %v129_v10  ;;  %v107_v11 = vshrl.u32 %v106_v9, 7 }
  0xda   :  { %v135_v13 = vsel %vm118_vm0, %v131_v12, 0.0  ;;  %v108_v12 = vsub.s32 0, %v107_v11 }
  0xdb   :  { %136 = vadd.xlane.f32.xlu1 %v135_v13  ;;  %v3541_v13 = vmov -1e+09  }
 0x164   :  { %v134_v17 = vpop.xlane.xlu1 %133 }
 0x165   :  { %v138_v18 = vmul.f32 0.03125, %v134_v17 }
 0x167   :  { %v140_v19 = vadd.f32 1e-06, %v138_v18 }
 0x168   :  { %v137_v20 = vpop.xlane.xlu1 %136 }
 0x169   :  { %3350 = vrsqrt.f32 %v140_v19  ;;  %v139_v21 = vmul.f32 0.03125, %v137_v20 }
 0x16b   :  { %v141_v22 = vadd.f32 1e-06, %v139_v21 }
 0x16d   :  { %3352 = vrsqrt.f32 %v141_v22 }
 0x173   :  { %v3351_v23 = vpop.eup %3350 }
 0x174   :  { %v144_v24 = vmul.f32 %v3351_v23, %v128_v6  ;;  %v99_v23 = vld [vmem:[%s4346_s1 + $0x1] sm:$0x1] }
 0x175   :  { %vm101_vm4 = vcmp.gt.f32.partialorder %v99_v23, 0.0 }
 0x176   :  { %v152_v28 = vmul.f32 %v2823_v25, %v144_v24 }
 0x177   :  { %v3353_v26 = vpop.eup %3352 }
 0x178   :  { %v145_v27 = vmul.f32 %v3353_v26, %v129_v10  ;;  %v160_v31 = vadd.f32 %v2824_v29, %v152_v28  ;;  %v98_v10 = vld [vmem:[%s4346_s1] sm:$0x1]  ;;  %s3542_s1 = smov 64  }
 0x179   :  { %vm100_vm3 = vcmp.gt.f32.partialorder %v98_v10, 0.0 }
 0x17a   :  { %v153_v30 = vmul.f32 %v2823_v25, %v145_v27  ;;  %v102_v14 = vsel %vm100_vm3, 0.0, %v3541_v13 }
 0x17b   :  { %v3802_v16 = vrot.slane %v102_v14, %v108_v12 }
 0x17c   :  { %v161_v32 = vadd.f32 %v2824_v29, %v153_v30 }
 0x17e   :  { %v162_v33 = vpack.c.bf16 %v161_v32, %v160_v31 }
 0x180   :  { %3024 = vmatmul.mubr.msk.bf16.vlgmr.msra.gmra.mrb[0].mxu1 %vm118_vm0, %v162_v33 }
 0x181   :  { %3029 = vmatprep.mubr.msk.bf16.mxu1 %vm3536_vm1, %v3535_v15 }
 0x253   :  { %v223_v35 = vpop.f32.mrb[0].mxu1 }
 0x254   :  { %v224_v36 = vadd.f32 %v2825_v34, %v223_v35  ;;  %v3025_v37 = vpop.f32.mrb[1].mxu1 }
 0x255   :  { %v226_v38 = vpop.f32.mrb[2].mxu1 }
 0x256   :  { %238 = vrot.lane.b32.xlu1 %v224_v36, %s3537_s28  ;;  %232 = vrot.lane.b32.xlu0 %v224_v36, %s3538_s29  ;;  %v3026_v39 = vpop.f32.mrb[3].mxu1  ;;  %v227_v40 = vadd.f32 %v2825_v34, %v226_v38  ;;  %v3717_v41 = vpack.c.bf16 %v224_v36, %v224_v36 }
 0x258   :  { %v3733_v49 = vpack.c.bf16 %v227_v40, %v227_v40 }
 0x25a   :  { %244 = vrot.lane.b32.xlu1 %v224_v36, %s3539_s30  ;;  %240 = vrot.lane.b32.xlu0 %v227_v40, %s3537_s28  ;;  %v103_v36 = vsel %vm101_vm4, 0.0, %v3541_v13 }
 0x25b   :  { %v3819_v37 = vrot.slane %v103_v36, %v108_v12 }
 0x25e   :  { %259 = vrot.lane.b32.xlu0 %v3717_v41, %s3540_s25  ;;  %234 = vrot.lane.b32.xlu1 %v227_v40, %s3538_s29 }
 0x262   :  { %246 = vrot.lane.b32.xlu1 %v227_v40, %s3539_s30 }
 0x2c8   :  { %v239_v42 = vpop.permute.xlu1 %238  ;;  %v233_v43 = vpop.permute.xlu0 %232 }
 0x2c9   :  { %v3723_v44 = vpack.c.bf16 %v239_v42, %v239_v42  ;;  %v3725_v45 = vpack.c.bf16 %v233_v43, %v233_v43 }
 0x2cb   :  { %358 = vrot.lane.b32.xlu0 %v3723_v44, %s3540_s25  ;;  %309 = vrot.lane.b32.xlu1 %v3725_v45, %s3540_s25 }
 0x2cc   :  { %v245_v46 = vpop.permute.xlu1 %244  ;;  %v241_v47 = vpop.permute.xlu0 %240 }
 0x2cd   :  { %v3731_v48 = vpack.c.bf16 %v245_v46, %v245_v46  ;;  %v3739_v52 = vpack.c.bf16 %v241_v47, %v241_v47 }
 0x2cf   :  { %407 = vrot.lane.b32.xlu1 %v3731_v48, %s3540_s25  ;;  %456 = vrot.lane.b32.xlu0 %v3733_v49, %s3540_s25 }
 0x2d0   :  { %v260_v50 = vpop.permute.xlu0 %259  ;;  %v235_v51 = vpop.permute.xlu1 %234 }
 0x2d1   :  { %v266_v53 = vsel %vm261_vm2, %v260_v50, 0  ;;  %v3742_v54 = vpack.c.bf16 %v235_v51, %v235_v51 }
 0x2d2   :  { %3028 = vmatpush3.bf16.xpose.msra.mxu1 %v266_v53 }
 0x2d3   :  { %505 = vrot.lane.b32.xlu1 %v3742_v54, %s3540_s25  ;;  %554 = vrot.lane.b32.xlu0 %v3739_v52, %s3540_s25 }
 0x2d4   :  { %v247_v55 = vpop.permute.xlu1 %246  ;;  %3039 = vmatprep.subr.bf16.mxu1 %v3535_v15 }
 0x2d5   :  { %v3749_v56 = vpack.c.bf16 %v247_v55, %v247_v55 }
 0x2d7   :  { %603 = vrot.lane.b32.xlu1 %v3749_v56, %s3540_s25 }
 0x2d9   :  { %3030 = vmatmul.mubr.msk.bf16.vlgmr.msra.gmra.mrb[4].mxu1 %vm261_vm2, %v3717_v41 }
 0x2da   :  { %3041 = vmatprep.mubr.msk.bf16.mxu1 %vm3536_vm1, %v3535_v15 }
 0x33d   :  { %v359_v57 = vpop.permute.xlu0 %358  ;;  %v310_v58 = vpop.permute.xlu1 %309 }
 0x33e   :  { %v364_v59 = vsel %vm261_vm2, %v359_v57, 0  ;;  %v315_v60 = vsel %vm261_vm2, %v310_v58, 0 }
 0x33f   :  { %3034 = vmatpush3.bf16.xpose.msra.mxu0 %v315_v60  ;;  %3040 = vmatpush3.bf16.xpose.msra.mxu1 %v364_v59 }
 0x340   :  { %3045 = vmatprep.subr.bf16.mxu0 %v3535_v15  ;;  %3051 = vmatprep.subr.bf16.mxu1 %v3535_v15 }
 0x341   :  { %v408_v61 = vpop.permute.xlu1 %407  ;;  %v457_v62 = vpop.permute.xlu0 %456 }
 0x342   :  { %v413_v63 = vsel %vm261_vm2, %v408_v61, 0  ;;  %v462_v2 = vsel %vm261_vm2, %v457_v62, 0 }
 0x345   :  { %v506_v3 = vpop.permute.xlu1 %505  ;;  %v555_v4 = vpop.permute.xlu0 %554 }
 0x346   :  { %3036 = vmatmul.mubr.msk.bf16.vlgmr.msra.gmra.mrb[0].mxu0 %vm261_vm2, %v3725_v45  ;;  %3042 = vmatmul.mubr.msk.bf16.vlgmr.msra.gmra.mrb[8].mxu1 %vm261_vm2, %v3723_v44  ;;  %v511_v5 = vsel %vm261_vm2, %v506_v3, 0  ;;  %v560_v6 = vsel %vm261_vm2, %v555_v4, 0 }
 0x347   :  { %3046 = vmatpush3.bf16.xpose.msra.mxu0 %v413_v63  ;;  %3052 = vmatpush3.bf16.xpose.msra.mxu1 %v462_v2 }
 0x348   :  { %3047 = vmatprep.mubr.msk.bf16.mxu0 %vm3536_vm1, %v3535_v15  ;;  %3053 = vmatprep.mubr.msk.bf16.mxu1 %vm3536_vm1, %v3535_v15 }
 0x349   :  { %3057 = vmatprep.subr.bf16.mxu0 %v3535_v15  ;;  %3063 = vmatprep.subr.bf16.mxu1 %v3535_v15  ;;  %v604_v7 = vpop.permute.xlu1 %603 }
 0x34a   :  { %v609_v8 = vsel %vm261_vm2, %v604_v7, 0 }
 0x34e   :  { %3048 = vmatmul.mubr.msk.bf16.vlgmr.msra.gmra.mrb[4].mxu0 %vm261_vm2, %v3731_v48  ;;  %3054 = vmatmul.mubr.msk.bf16.vlgmr.msra.gmra.mrb[12].mxu1 %vm261_vm2, %v3733_v49 }
 0x34f   :  { %3058 = vmatpush3.bf16.xpose.msra.mxu0 %v511_v5  ;;  %3064 = vmatpush3.bf16.xpose.msra.mxu1 %v560_v6 }
 0x350   :  { %3059 = vmatprep.mubr.msk.bf16.mxu0 %vm3536_vm1, %v3535_v15  ;;  %3065 = vmatprep.mubr.msk.bf16.mxu1 %vm3536_vm1, %v3535_v15 }
 0x351   :  { %3069 = vmatprep.subr.bf16.mxu0 %v3535_v15  ;;  %3075 = vmatprep.subr.bf16.mxu1 %v3535_v15 }
 0x356   :  { %3060 = vmatmul.mubr.msk.bf16.vlgmr.msra.gmra.mrb[8].mxu0 %vm261_vm2, %v3742_v54  ;;  %3066 = vmatmul.mubr.msk.bf16.vlgmr.msra.gmra.mrb[16].mxu1 %vm261_vm2, %v3739_v52 }
 0x357   :  { %3070 = vmatpush3.bf16.xpose.msra.mxu0 %v609_v8  ;;  %3071 = vmatprep.mubr.msk.bf16.mxu0 %vm3536_vm1, %v3535_v15 }
 0x358   :  { %3081 = vmatprep.subr.bf16.mxu0 %v3535_v15  ;;  %3077 = vmatprep.mubr.msk.bf16.mxu1 %vm3536_vm1, %v3535_v15 }
 0x35e   :  { %3072 = vmatmul.mubr.msk.bf16.vlgmr.msra.gmra.mrb[12].mxu0 %vm261_vm2, %v3749_v56 }
 0x35f   :  { %3083 = vmatprep.mubr.msk.bf16.mxu0 %vm3536_vm1, %v3535_v15 }
 0x3ac   :  { %v302_v17 = vpop.f32.mrb[4].mxu1 }
 0x3ad   :  { %v303_v18 = vadd.f32 %v302_v17, %v3802_v16  ;;  %v3031_v19 = vpop.f32.mrb[5].mxu1 }
 0x3ae   :  { %v305_v20 = vpop.f32.mrb[6].mxu1 }
 0x3af   :  { %v3032_v21 = vpop.f32.mrb[7].mxu1  ;;  %v651_v22 = vsel %vm261_vm2, %v303_v18, -inf }
 0x3b0   :  { %652 = vmax.xlane.f32.xlu0 %v651_v22 }
 0x419   :  { %v351_v24 = vpop.f32.mrb[0].mxu0  ;;  %v400_v25 = vpop.f32.mrb[8].mxu1 }
 0x41a   :  { %v3810_v26 = vadd.f32 %v351_v24, %v3802_v16  ;;  %v3813_v27 = vadd.f32 %v400_v25, %v3802_v16  ;;  %v3037_v28 = vpop.f32.mrb[1].mxu0  ;;  %v3043_v29 = vpop.f32.mrb[9].mxu1 }
 0x41b   :  { %v354_v30 = vpop.f32.mrb[2].mxu0  ;;  %v403_v31 = vpop.f32.mrb[10].mxu1 }
 0x41c   :  { %v3038_v32 = vpop.f32.mrb[3].mxu0  ;;  %v3044_v33 = vpop.f32.mrb[11].mxu1  ;;  %v654_v34 = vsel %vm261_vm2, %v3810_v26, -inf  ;;  %v657_v35 = vsel %vm261_vm2, %v3813_v27, -inf }
 0x41d   :  { %655 = vmax.xlane.f32.xlu1 %v654_v34  ;;  %658 = vmax.xlane.f32.xlu0 %v657_v35 }
 0x421   :  { %v449_v38 = vpop.f32.mrb[4].mxu0  ;;  %v498_v39 = vpop.f32.mrb[12].mxu1 }
 0x422   :  { %v3822_v40 = vadd.f32 %v449_v38, %v3802_v16  ;;  %v3049_v42 = vpop.f32.mrb[5].mxu0  ;;  %v3055_v43 = vpop.f32.mrb[13].mxu1  ;;  %v3825_v50 = vadd.f32 %v498_v39, %v3819_v37 }
 0x423   :  { %v452_v46 = vpop.f32.mrb[6].mxu0  ;;  %v501_v47 = vpop.f32.mrb[14].mxu1 }
 0x424   :  { %v3050_v51 = vpop.f32.mrb[7].mxu0  ;;  %v3056_v53 = vpop.f32.mrb[15].mxu1  ;;  %v660_v55 = vsel %vm261_vm2, %v3822_v40, -inf  ;;  %v663_v57 = vsel %vm261_vm2, %v3825_v50, -inf }
 0x425   :  { %661 = vmax.xlane.f32.xlu0 %v660_v55 }
 0x429   :  { %v547_v58 = vpop.f32.mrb[8].mxu0  ;;  %664 = vmax.xlane.f32.xlu0 %v663_v57  ;;  %v596_v59 = vpop.f32.mrb[16].mxu1 }
 0x42a   :  { %v3832_v60 = vadd.f32 %v547_v58, %v3819_v37  ;;  %v3835_v61 = vadd.f32 %v596_v59, %v3819_v37  ;;  %v3061_v62 = vpop.f32.mrb[9].mxu0  ;;  %v3067_v63 = vpop.f32.mrb[17].mxu1 }
 0x42b   :  { %v550_v2 = vpop.f32.mrb[10].mxu0  ;;  %v599_v3 = vpop.f32.mrb[18].mxu1 }
 0x42c   :  { %v3062_v4 = vpop.f32.mrb[11].mxu0  ;;  %v3068_v5 = vpop.f32.mrb[19].mxu1  ;;  %v666_v6 = vsel %vm261_vm2, %v3832_v60, -inf  ;;  %v669_v7 = vsel %vm261_vm2, %v3835_v61, -inf }
 0x42d   :  { %667 = vmax.xlane.f32.xlu1 %v666_v6  ;;  %670 = vmax.xlane.f32.xlu0 %v669_v7 }
 0x431   :  { %v645_v8 = vpop.f32.mrb[12].mxu0 }
 0x432   :  { %v3073_v9 = vpop.f32.mrb[13].mxu0  ;;  %v3850_v19 = vadd.f32 %v645_v8, %v3819_v37 }
 0x433   :  { %v648_v10 = vpop.f32.mrb[14].mxu0 }
 0x434   :  { %v3074_v11 = vpop.f32.mrb[15].mxu0 }
 0x43d   :  { %v653_v12 = vpop.xlane.xlu0 %652 }
 0x43e   :  { %796 = vrot.lane.b32.xlu1 %v3725_v45, %s3542_s1  ;;  %v675_v13 = vsub.f32 %v303_v18, %v653_v12  ;;  %v672_v45 = vsel %vm261_vm2, %v3850_v19, -inf }
 0x440   :  { %v683_v14 = vmul.f32 1.442695, %v675_v13 }
 0x442   :  { %844 = vrot.lane.b32.xlu1 %v3723_v44, %s3542_s1  ;;  %3354 = vpow2.f32 %v683_v14 }
 0x443   :  { %747 = vrot.lane.b32.xlu0 %v3717_v41, %s3542_s1 }
 0x44c   :  { %v3847_v17 = vpop.eup %3354 }
 0x44d   :  { %v699_v20 = vsel %vm261_vm2, %v3847_v17, 0.0 }
 0x462   :  { %700 = vadd.xlane.f32.xlu0 %v699_v20 }
 0x466   :  { %673 = vmax.xlane.f32.xlu1 %v672_v45 }
 0x477   :  { %892 = vrot.lane.b32.xlu1 %v3731_v48, %s3542_s1 }
 0x4aa   :  { %v656_v41 = vpop.xlane.xlu1 %655  ;;  %v659_v44 = vpop.xlane.xlu0 %658 }
 0x4ab   :  { %v676_v18 = vsub.f32 %v3810_v26, %v656_v41  ;;  %v677_v21 = vsub.f32 %v3813_v27, %v659_v44 }
 0x4ad   :  { %v685_v22 = vmul.f32 1.442695, %v676_v18  ;;  %v687_v23 = vmul.f32 1.442695, %v677_v21 }
 0x4af   :  { %3356 = vpow2.f32 %v685_v22 }
 0x4b0   :  { %3358 = vpow2.f32 %v687_v23 }
 0x4b2   :  { %v662_v24 = vpop.xlane.xlu0 %661 }
 0x4b3   :  { %v678_v35 = vsub.f32 %v3822_v40, %v662_v24 }
 0x4b5   :  { %v689_v38 = vmul.f32 1.442695, %v678_v35 }
 0x4b6   :  { %v665_v25 = vpop.xlane.xlu0 %664 }
 0x4b7   :  { %v679_v36 = vsub.f32 %v3825_v50, %v665_v25  ;;  %3360 = vpow2.f32 %v689_v38 }
 0x4b9   :  { %v3860_v28 = vpop.eup %3356  ;;  %v691_v42 = vmul.f32 1.442695, %v679_v36 }
 0x4ba   :  { %v3862_v29 = vpop.eup %3358  ;;  %v668_v30 = vpop.xlane.xlu1 %667  ;;  %v702_v48 = vsel %vm261_vm2, %v3860_v28, 0.0 }
 0x4bb   :  { %v671_v31 = vpop.xlane.xlu0 %670  ;;  %703 = vadd.xlane.f32.xlu1 %v702_v48  ;;  %v705_v26 = vsel %vm261_vm2, %v3862_v29, 0.0  ;;  %v680_v39 = vsub.f32 %v3832_v60, %v668_v30  ;;  %3362 = vpow2.f32 %v691_v42 }
 0x4bc   :  { %706 = vadd.xlane.f32.xlu0 %v705_v26  ;;  %v681_v43 = vsub.f32 %v3835_v61, %v671_v31 }
 0x4bd   :  { %v693_v46 = vmul.f32 1.442695, %v680_v39 }
 0x4be   :  { %v797_v27 = vpop.permute.xlu1 %796  ;;  %v695_v47 = vmul.f32 1.442695, %v681_v43 }
 0x4bf   :  { %v748_v32 = vpop.permute.xlu0 %747  ;;  %v802_v33 = vsel %vm752_vm5, %v797_v27, 0  ;;  %3364 = vpow2.f32 %v693_v46 }
 0x4c0   :  { %v754_v34 = vsel %vm752_vm5, %v748_v32, 0  ;;  %3082 = vmatpush3.bf16.msra.mxu0 %v802_v33  ;;  %3366 = vpow2.f32 %v695_v47 }
 0x4c1   :  { %3076 = vmatpush3.bf16.msra.mxu1 %v754_v34  ;;  %3093 = vmatprep.subr.bf16.mxu0 %v3535_v15 }
 0x4c2   :  { %3087 = vmatprep.subr.bf16.mxu1 %v3535_v15 }
 0x4cc   :  { %988 = vrot.lane.b32.xlu1 %v3742_v54, %s3542_s1  ;;  %v3880_v54 = vpop.eup %3360 }
 0x4cd   :  { %v3882_v51 = vpop.eup %3362  ;;  %v708_v50 = vsel %vm261_vm2, %v3880_v54, 0.0 }
 0x4ce   :  { %v3886_v53 = vpop.eup %3364  ;;  %v711_v55 = vsel %vm261_vm2, %v3882_v51, 0.0 }
 0x4cf   :  { %v3890_v57 = vpop.eup %3366  ;;  %v714_v59 = vsel %vm261_vm2, %v3886_v53, 0.0 }
 0x4d0   :  { %v717_v61 = vsel %vm261_vm2, %v3890_v57, 0.0 }
 0x4d2   :  { %940 = vrot.lane.b32.xlu0 %v3733_v49, %s3542_s1  ;;  %v845_v49 = vpop.permute.xlu1 %844 }
 0x4d3   :  { %v850_v4 = vsel %vm752_vm5, %v845_v49, 0 }
 0x4ef   :  { %v701_v40 = vpop.xlane.xlu0 %700 }
 0x4f0   :  { %3368 = vrcp.f32 %v701_v40  ;;  %709 = vadd.xlane.f32.xlu1 %v708_v50 }
 0x4f1   :  { %712 = vadd.xlane.f32.xlu0 %v711_v55 }
 0x4f3   :  { %v674_v58 = vpop.xlane.xlu1 %673 }
 0x4f4   :  { %v682_v60 = vsub.f32 %v3850_v19, %v674_v58  ;;  %715 = vadd.xlane.f32.xlu1 %v714_v59 }
 0x4f5   :  { %718 = vadd.xlane.f32.xlu0 %v717_v61 }
 0x4f6   :  { %v697_v62 = vmul.f32 1.442695, %v682_v60 }
 0x4f7   :  { %v893_v7 = vpop.permute.xlu1 %892 }
 0x4f8   :  { %3370 = vpow2.f32 %v697_v62  ;;  %v898_v20 = vsel %vm752_vm5, %v893_v7, 0 }
 0x4fa   :  { %v3369_v63 = vpop.eup %3368 }
 0x4fb   :  { %v731_v2 = vmul.f32 %v3369_v63, %v3847_v17  ;;  %v3332_v63 = vld [vmem:[%s4351_s6] sm:$0xff]  }
 0x4fd   :  { %v739_v3 = vpack.c.bf16 %v731_v2, %v731_v2 }
 0x4ff   :  { %3078 = vmatmul.mubr.msk.bf16.vlgmr.msra.gmra.mrb[20].mxu1 %vm261_vm2, %v739_v3 }
 0x500   :  { %3088 = vmatpush3.bf16.msra.mxu1 %v850_v4  ;;  %3089 = vmatprep.mubr.msk.bf16.mxu1 %vm3536_vm1, %v3535_v15 }
 0x501   :  { %3099 = vmatprep.subr.bf16.mxu1 %v3535_v15 }
 0x502   :  { %v3903_v5 = vpop.eup %3370 }
 0x503   :  { %v720_v6 = vsel %vm261_vm2, %v3903_v5, 0.0 }
 0x504   :  { %721 = vadd.xlane.f32.xlu1 %v720_v6 }
 0x50b   :  { %1036 = vrot.lane.b32.xlu0 %v3739_v52, %s3542_s1 }
 0x515   :  { %1084 = vrot.lane.b32.xlu1 %v3749_v56, %s3542_s1 }
 0x548   :  { %v704_v8 = vpop.xlane.xlu1 %703 }
 0x549   :  { %3372 = vrcp.f32 %v704_v8  ;;  %v707_v9 = vpop.xlane.xlu0 %706 }
 0x54a   :  { %3374 = vrcp.f32 %v707_v9 }
 0x54c   :  { %v989_v56 = vpop.permute.xlu1 %988 }
 0x54d   :  { %v941_v14 = vpop.permute.xlu0 %940  ;;  %v994_v48 = vsel %vm752_vm5, %v989_v56, 0 }
 0x54e   :  { %v946_v52 = vsel %vm752_vm5, %v941_v14, 0 }
 0x553   :  { %v3373_v10 = vpop.eup %3372 }
 0x554   :  { %v3375_v11 = vpop.eup %3374  ;;  %v732_v12 = vmul.f32 %v3373_v10, %v3860_v28 }
 0x555   :  { %v733_v13 = vmul.f32 %v3375_v11, %v3862_v29 }
 0x556   :  { %v740_v17 = vpack.c.bf16 %v732_v12, %v732_v12 }
 0x557   :  { %v741_v19 = vpack.c.bf16 %v733_v13, %v733_v13 }
 0x558   :  { %3084 = vmatmul.mubr.msk.bf16.vlgmr.msra.gmra.mrb[16].mxu0 %vm261_vm2, %v740_v17 }
 0x559   :  { %3090 = vmatmul.mubr.msk.bf16.vlgmr.msra.gmra.mrb[24].mxu1 %vm261_vm2, %v741_v19  ;;  %3094 = vmatpush3.bf16.msra.mxu0 %v898_v20  ;;  %v3333_v20 = vld [vmem:[%s4351_s6 + $0x8] sm:$0xff]  }
 0x55a   :  { %3100 = vmatpush3.bf16.msra.mxu1 %v946_v52  ;;  %3095 = vmatprep.mubr.msk.bf16.mxu0 %vm3536_vm1, %v3535_v15 }
 0x55b   :  { %3101 = vmatprep.mubr.msk.bf16.mxu1 %vm3536_vm1, %v3535_v15  ;;  %3105 = vmatprep.subr.bf16.mxu0 %v3535_v15 }
 0x55c   :  { %3111 = vmatprep.subr.bf16.mxu1 %v3535_v15 }
 0x57d   :  { %v710_v45 = vpop.xlane.xlu1 %709 }
 0x57e   :  { %3376 = vrcp.f32 %v710_v45  ;;  %v713_v41 = vpop.xlane.xlu0 %712 }
 0x57f   :  { %3378 = vrcp.f32 %v713_v41 }
 0x581   :  { %v716_v44 = vpop.xlane.xlu1 %715 }
 0x582   :  { %3380 = vrcp.f32 %v716_v44  ;;  %v719_v18 = vpop.xlane.xlu0 %718 }
 0x583   :  { %3382 = vrcp.f32 %v719_v18 }
 0x586   :  { %v1037_v25 = vpop.permute.xlu0 %1036 }
 0x587   :  { %v1042_v26 = vsel %vm752_vm5, %v1037_v25, 0 }
 0x588   :  { %v3377_v21 = vpop.eup %3376 }
 0x589   :  { %v3379_v22 = vpop.eup %3378  ;;  %v734_v23 = vmul.f32 %v3377_v21, %v3880_v54 }
 0x58a   :  { %v735_v24 = vmul.f32 %v3379_v22, %v3882_v51 }
 0x58b   :  { %v742_v28 = vpack.c.bf16 %v734_v23, %v734_v23 }
 0x58c   :  { %v3381_v29 = vpop.eup %3380  ;;  %v743_v30 = vpack.c.bf16 %v735_v24, %v735_v24 }
 0x58d   :  { %v3383_v31 = vpop.eup %3382  ;;  %3096 = vmatmul.mubr.msk.bf16.vlgmr.msra.gmra.mrb[20].mxu0 %vm261_vm2, %v742_v28  ;;  %v736_v27 = vmul.f32 %v3381_v29, %v3886_v53 }
 0x58e   :  { %3102 = vmatmul.mubr.msk.bf16.vlgmr.msra.gmra.mrb[28].mxu1 %vm261_vm2, %v743_v30  ;;  %3106 = vmatpush3.bf16.msra.mxu0 %v994_v48  ;;  %v737_v32 = vmul.f32 %v3383_v31, %v3890_v57 }
 0x58f   :  { %3112 = vmatpush3.bf16.msra.mxu1 %v1042_v26  ;;  %3107 = vmatprep.mubr.msk.bf16.mxu0 %vm3536_vm1, %v3535_v15  ;;  %v744_v34 = vpack.c.bf16 %v736_v27, %v736_v27 }
 0x590   :  { %3113 = vmatprep.mubr.msk.bf16.mxu1 %vm3536_vm1, %v3535_v15  ;;  %3117 = vmatprep.subr.bf16.mxu0 %v3535_v15  ;;  %v745_v35 = vpack.c.bf16 %v737_v32, %v737_v32 }
 0x591   :  { %v722_v33 = vpop.xlane.xlu1 %721  ;;  %3123 = vmatprep.subr.bf16.mxu1 %v3535_v15 }
 0x592   :  { %3384 = vrcp.f32 %v722_v33 }
 0x595   :  { %3108 = vmatmul.mubr.msk.bf16.vlgmr.msra.gmra.mrb[24].mxu0 %vm261_vm2, %v744_v34  ;;  %v1085_v36 = vpop.permute.xlu1 %1084 }
 0x596   :  { %v1090_v38 = vsel %vm752_vm5, %v1085_v36, 0  ;;  %3114 = vmatmul.mubr.msk.bf16.vlgmr.msra.gmra.mrb[32].mxu1 %vm261_vm2, %v745_v35  ;;  %3119 = vmatprep.mubr.msk.bf16.mxu0 %vm3536_vm1, %v3535_v15  ;;  %v2845_v35 = vld [vmem:[%s4352_s7] ss:$0 sm:$0xff] }
 0x597   :  { %3118 = vmatpush3.bf16.msra.mxu0 %v1090_v38  ;;  %3127 = vmatprep.mubr.msk.bf16.mxu1 %vm3536_vm1, %v3535_v15 }
 0x598   :  { %3131 = vmatprep.subr.bf16.mxu0 %v3535_v15  ;;  %3124 = vmatpush3.bf16.msra.mxu1 %v3332_v63  ;;  %v3336_v63 = vld [vmem:[%s4357_s12] sm:$0xff]  }
 0x599   :  { %3125 = vmatprep.subr.bf16.mxu1 %v3535_v15 }
 0x59c   :  { %v3385_v39 = vpop.eup %3384  ;;  %3126 = vmatpush3.bf16.msra.mxu1 %v3333_v20 }
 0x59d   :  { %v738_v42 = vmul.f32 %v3385_v39, %v3903_v5  ;;  %3139 = vmatprep.subr.bf16.mxu1 %v3535_v15 }
 0x59f   :  { %v746_v43 = vpack.c.bf16 %v738_v42, %v738_v42 }
 0x5a1   :  { %3120 = vmatmul.mubr.msk.bf16.vlgmr.msra.gmra.mrb[28].mxu0 %vm261_vm2, %v746_v43 }
 0x5a2   :  { %3135 = vmatprep.mubr.msk.bf16.mxu0 %vm3536_vm1, %v3535_v15 }
 0x5d2   :  { %v790_v46 = vpop.f32.mrb[20].mxu1 }
 0x5d3   :  { %v3079_v47 = vpop.f32.mrb[21].mxu1 }
 0x5d4   :  { %v793_v54 = vpop.f32.mrb[22].mxu1 }
 0x5d5   :  { %v3080_v51 = vpop.f32.mrb[23].mxu1 }
 0x62b   :  { %v838_v49 = vpop.f32.mrb[16].mxu0 }
 0x62c   :  { %v886_v40 = vpop.f32.mrb[24].mxu1  ;;  %v3085_v50 = vpop.f32.mrb[17].mxu0 }
 0x62d   :  { %v3091_v53 = vpop.f32.mrb[25].mxu1  ;;  %v841_v55 = vpop.f32.mrb[18].mxu0 }
 0x62e   :  { %v889_v57 = vpop.f32.mrb[26].mxu1  ;;  %v3086_v58 = vpop.f32.mrb[19].mxu0 }
 0x62f   :  { %v3092_v59 = vpop.f32.mrb[27].mxu1 }
 0x660   :  { %v934_v60 = vpop.f32.mrb[20].mxu0 }
 0x661   :  { %v982_v61 = vpop.f32.mrb[28].mxu1  ;;  %v3097_v62 = vpop.f32.mrb[21].mxu0 }
 0x662   :  { %v3103_v2 = vpop.f32.mrb[29].mxu1  ;;  %v937_v3 = vpop.f32.mrb[22].mxu0  ;;  %v3335_v62 = vld [vmem:[%s4355_s10 + $0x8] sm:$0xff]  }
 0x663   :  { %v985_v4 = vpop.f32.mrb[30].mxu1  ;;  %v3098_v5 = vpop.f32.mrb[23].mxu0  ;;  %v3337_v2 = vld [vmem:[%s4357_s12 + $0x8] sm:$0xff]  }
 0x664   :  { %v3104_v6 = vpop.f32.mrb[31].mxu1 }
 0x668   :  { %v1030_v7 = vpop.f32.mrb[24].mxu0 }
 0x669   :  { %v3300_v8 = vpack.i.bf16 %v1030_v7, %v838_v49  ;;  %v1078_v9 = vpop.f32.mrb[32].mxu1  ;;  %v3109_v10 = vpop.f32.mrb[25].mxu0 }
 0x66a   :  { %v3305_v11 = vpack.i.bf16 %v1078_v9, %v886_v40  ;;  %v3115_v12 = vpop.f32.mrb[33].mxu1  ;;  %v1033_v13 = vpop.f32.mrb[26].mxu0 }
 0x66b   :  { %v1081_v14 = vpop.f32.mrb[34].mxu1  ;;  %v3110_v17 = vpop.f32.mrb[27].mxu0  ;;  %3301 = vrot.lane.b32.xlu0 %v3300_v8, %s3533_s22 }
 0x66c   :  { %3306 = vrot.lane.b32.xlu1 %v3305_v11, %s4369_s21  ;;  %v3116_v19 = vpop.f32.mrb[35].mxu1  ;;  %v2849_v11 = vld [vmem:[%s4353_s8] ss:$0 sm:$0xff]  ;;  %v2850_v17 = vld [vmem:[#allocation5] ss:$0 sm:$0xff] }
 0x674   :  { %v1126_v52 = vpop.f32.mrb[28].mxu0 }
 0x675   :  { %v3310_v56 = vpack.i.bf16 %v1126_v52, %v934_v60  ;;  %v3121_v45 = vpop.f32.mrb[29].mxu0 }
 0x676   :  { %v1129_v41 = vpop.f32.mrb[30].mxu0  ;;  %v3338_v45 = vld [vmem:[%s4357_s12 + $0x10] sm:$0xff]  }
 0x677   :  { %v3122_v44 = vpop.f32.mrb[31].mxu0  ;;  %3311 = vrot.lane.b32.xlu0 %v3310_v56, %s3543_s26  ;;  %v3339_v41 = vld [vmem:[%s4357_s12 + $0x18] sm:$0xff]  }
 0x678   :  { %v2851_v44 = vld [vmem:[#allocation7] ss:$0 sm:$0xff] }
 0x6dd   :  { %v3302_v18 = vpop.permute.xlu0 %3301 }
 0x6de   :  { %v3304_v21 = vunpack.i.h.bf16 %v3302_v18  ;;  %v3303_v22 = vunpack.i.l.bf16 %v3302_v18  ;;  %v3307_v23 = vpop.permute.xlu1 %3306 }
 0x6df   :  { %v3309_v24 = vunpack.i.h.bf16 %v3307_v23  ;;  %v3308_v25 = vunpack.i.l.bf16 %v3307_v23 }
 0x6e0   :  { %v1156_v28 = vsel %vm261_vm2, %v790_v46, %v3303_v22  ;;  %v1157_v29 = vsel %vm261_vm2, %v982_v61, %v3304_v21  ;;  %v3334_v61 = vld [vmem:[%s4355_s10] sm:$0xff]  }
 0x6e1   :  { %v1160_v26 = vsel %vm1158_vm6, %v1157_v29, %v3309_v24  ;;  %v1159_v27 = vsel %vm1158_vm6, %v1156_v28, %v3308_v25  ;;  %3132 = vmatpush3.bf16.msra.mxu0 %v3334_v61 }
 0x6e2   :  { %3133 = vmatprep.subr.bf16.mxu0 %v3535_v15 }
 0x6e5   :  { %3134 = vmatpush3.bf16.msra.mxu0 %v3335_v62 }
 0x6e6   :  { %3151 = vmatprep.subr.bf16.mxu0 %v3535_v15 }
 0x6e9   :  { %v3312_v30 = vpop.permute.xlu0 %3311 }
 0x6ea   :  { %v3314_v31 = vunpack.i.h.bf16 %v3312_v30  ;;  %v3313_v48 = vunpack.i.l.bf16 %v3312_v30 }
 0x6ec   :  { %v1162_v32 = vsel %vm1161_vm7, %v1159_v27, %v3313_v48  ;;  %v1163_v33 = vsel %vm1161_vm7, %v1160_v26, %v3314_v31  ;;  %v2855_v31 = vld [vmem:[%s4358_s13] ss:$0 sm:$0xff] }
 0x6ed   :  { %v1164_v34 = vpack.c.bf16 %v1163_v33, %v1162_v32 }
 0x6ef   :  { %3128 = vmatmul.mubr.msk.bf16.vlgmr.msra.gmra.mrb[36].mxu1 %vm118_vm0, %v1164_v34 }
 0x6f0   :  { %3147 = vmatprep.mubr.msk.bf16.mxu1 %vm3536_vm1, %v3535_v15  ;;  %3140 = vmatpush3.bf16.msra.mxu1 %v3336_v63  ;;  %v2863_v63 = vld [vmem:[%s4347_s2 + $0x1] ss:$0 sm:$0xff]  ;;  %s2810_s2 = sshll.u32 %s3544_s19, 4  ;;  %s2811_s2 = int_to_ptr.vmem [resolvable:$true] %s2810_s2 }
 0x6f1   :  { %3141 = vmatprep.subr.bf16.mxu1 %v3535_v15  ;;  %p3505_p11 = scmp.lt.s32.totalorder %s2811_s2, %s2811_s2 }
 0x6f4   :  { %3142 = vmatpush3.bf16.msra.mxu1 %v3337_v2 }
 0x6f5   :  { %3143 = vmatprep.subr.bf16.mxu1 %v3535_v15 }
 0x6f8   :  { %3144 = vmatpush3.bf16.msra.mxu1 %v3338_v45 }
 0x6f9   :  { %3145 = vmatprep.subr.bf16.mxu1 %v3535_v15 }
 0x6fc   :  { %3146 = vmatpush3.bf16.msra.mxu1 %v3339_v41 }
 0x6fd   :  { %3165 = vmatprep.subr.bf16.mxu1 %v3535_v15 }
 0x7c2   :  { %v1225_v36 = vpop.f32.mrb[36].mxu1 }
 0x7c3   :  { %v1226_v38 = vadd.f32 %v2845_v35, %v1225_v36  ;;  %v3129_v39 = vpop.f32.mrb[37].mxu1 }
 0x7c4   :  { %v1228_v42 = vpop.f32.mrb[38].mxu1 }
 0x7c5   :  { %v3973_v43 = vadd.f32 %v1226_v38, %v3675_v0  ;;  %v1229_v46 = vadd.f32 %v2845_v35, %v1228_v42  ;;  %v3130_v47 = vpop.f32.mrb[39].mxu1 }
 0x7c7   :  { %v3976_v54 = vadd.f32 %v1229_v46, %v3677_v1  ;;  %v1236_v51 = vsel %vm118_vm0, %v3973_v43, 0.0 }
 0x7c8   :  { %1237 = vadd.xlane.f32.xlu1 %v1236_v51 }
 0x7c9   :  { %v1239_v49 = vsel %vm118_vm0, %v3976_v54, 0.0 }
 0x7ca   :  { %1240 = vadd.xlane.f32.xlu0 %v1239_v49 }
 0x855   :  { %v1238_v40 = vpop.xlane.xlu1 %1237 }
 0x856   :  { %v1242_v50 = vmul.f32 0.03125, %v1238_v40 }
 0x857   :  { %v1241_v53 = vpop.xlane.xlu0 %1240 }
 0x858   :  { %v1244_v55 = vsub.f32 %v3973_v43, %v1242_v50  ;;  %v1243_v0 = vmul.f32 0.03125, %v1241_v53 }
 0x85a   :  { %v1245_v57 = vsub.f32 %v3976_v54, %v1243_v0  ;;  %v1246_v58 = vmul.f32 %v1244_v55, %v1244_v55  ;;  %v3341_v0 = vld [vmem:[%s4349_s4 + $0x18] sm:$0xff]  }
 0x85c   :  { %v1248_v1 = vsel %vm118_vm0, %v1246_v58, 0.0  ;;  %v1247_v59 = vmul.f32 %v1245_v57, %v1245_v57 }
 0x85d   :  { %1249 = vadd.xlane.f32.xlu0 %v1248_v1 }
 0x85e   :  { %v1251_v60 = vsel %vm118_vm0, %v1247_v59, 0.0 }
 0x861   :  { %1252 = vadd.xlane.f32.xlu0 %v1251_v60 }
 0x8ea   :  { %v1250_v3 = vpop.xlane.xlu0 %1249 }
 0x8eb   :  { %v1254_v4 = vmul.f32 0.03125, %v1250_v3 }
 0x8ed   :  { %v1256_v5 = vadd.f32 1e-06, %v1254_v4 }
 0x8ee   :  { %v1253_v6 = vpop.xlane.xlu0 %1252 }
 0x8ef   :  { %3386 = vrsqrt.f32 %v1256_v5  ;;  %v1255_v7 = vmul.f32 0.03125, %v1253_v6  ;;  %v2864_v6 = vld [vmem:[%s4348_s3 + $0x1] ss:$0 sm:$0xff]  ;;  %s3500_s3 = scalar_lea.vmem %s2811_s2, 256 }
 0x8f0   :  { %p3501_p10 = scmp.ne.s32.totalorder %s2811_s2, %s3500_s3  ;;  %p3506_p12 = scmp.lt.s32.totalorder %s3500_s3, %s3500_s3 }
 0x8f1   :  { %v1257_v8 = vadd.f32 1e-06, %v1255_v7 }
 0x8f2   :  { %p3507_p13 = por %p3506_p12, %p3505_p11 }
 0x8f3   :  { %3388 = vrsqrt.f32 %v1257_v8 }
 0x8f4   :  { %p3508_p0 = pnand %p3507_p13, %p3501_p10 }
 0x8f9   :  { %v3387_v9 = vpop.eup %3386 }
 0x8fa   :  { %v1260_v10 = vmul.f32 %v3387_v9, %v1244_v55  ;;  %v3340_v55 = vld [vmem:[%s4349_s4 + $0x10] sm:$0xff]  }
 0x8fc   :  { %v1268_v13 = vmul.f32 %v2849_v11, %v1260_v10 }
 0x8fd   :  { %v3389_v12 = vpop.eup %3388 }
 0x8fe   :  { %v1261_v14 = vmul.f32 %v3389_v12, %v1245_v57  ;;  %v1276_v20 = vadd.f32 %v2850_v17, %v1268_v13 }
 0x900   :  { %v1269_v19 = vmul.f32 %v2849_v11, %v1261_v14  ;;  %v2870_v11 = vld [vmem:[%s4350_s5 + $0x1] ss:$0 sm:$0xff] }
 0x902   :  { %v1277_v52 = vadd.f32 %v2850_v17, %v1269_v19 }
 0x904   :  { %v1278_v56 = vpack.c.bf16 %v1277_v52, %v1276_v20 }
 0x906   :  { %3136 = vmatmul.mubr.msk.bf16.vlgmr.msra.gmra.mrb[32].mxu0 %vm118_vm0, %v1278_v56 }
 0x907   :  { %3155 = vmatprep.mubr.msk.bf16.mxu0 %vm3536_vm1, %v3535_v15  ;;  %3152 = vmatpush3.bf16.msra.mxu0 %v3340_v55 }
 0x908   :  { %3153 = vmatprep.subr.bf16.mxu0 %v3535_v15 }
 0x90b   :  { %3154 = vmatpush3.bf16.msra.mxu0 %v3341_v0 }
 0x90c   :  { %3159 = vmatprep.subr.bf16.mxu0 %v3535_v15 }
 0x9d9   :  { %v1339_v18 = vpop.f32.mrb[32].mxu0 }
 0x9da   :  { %v1340_v21 = vadd.f32 %v2851_v44, %v1339_v18  ;;  %v3137_v22 = vpop.f32.mrb[33].mxu0 }
 0x9db   :  { %v1342_v23 = vpop.f32.mrb[34].mxu0 }
 0x9dc   :  { %v1343_v24 = vadd.f32 %v2851_v44, %v1342_v23  ;;  %v3138_v25 = vpop.f32.mrb[35].mxu0  ;;  %v1346_v28 = vmax.f32 %v1340_v21, 0.0 }
 0x9de   :  { %v1347_v29 = vmax.f32 %v1343_v24, 0.0 }
 0x9e0   :  { %v1348_v30 = vpack.c.bf16 %v1347_v29, %v1346_v28 }
 0x9e2   :  { %3148 = vmatmul.mubr.msk.bf16.vlgmr.msra.gmra.mrb[40].mxu1 %vm1388_vm8, %v1348_v30 }
 0x9e3   :  { %3167 = vmatprep.mubr.msk.bf16.mxu1 %vm3536_vm1, %v3535_v15 }
 0xab5   :  { %v1426_v48 = vpop.f32.mrb[40].mxu1 }
 0xab6   :  { %v1427_v26 = vadd.f32 %v2855_v31, %v1426_v48  ;;  %v3149_v27 = vpop.f32.mrb[41].mxu1 }
 0xab7   :  { %v1429_v32 = vpop.f32.mrb[42].mxu1 }
 0xab8   :  { %v4023_v33 = vadd.f32 %v1427_v26, %v3973_v43  ;;  %v1430_v34 = vadd.f32 %v2855_v31, %v1429_v32  ;;  %v3150_v35 = vpop.f32.mrb[43].mxu1 }
 0xaba   :  { %v4026_v36 = vadd.f32 %v1430_v34, %v3976_v54  ;;  %v1439_v38 = vsel %vm118_vm0, %v4023_v33, 0.0 }
 0xabb   :  { %1440 = vadd.xlane.f32.xlu1 %v1439_v38 }
 0xabc   :  { %v1442_v39 = vsel %vm118_vm0, %v4026_v36, 0.0 }
 0xabd   :  { %1443 = vadd.xlane.f32.xlu0 %v1442_v39 }
 0xb48   :  { %v1441_v42 = vpop.xlane.xlu1 %1440 }
 0xb49   :  { %v1445_v46 = vmul.f32 0.03125, %v1441_v42 }
 0xb4a   :  { %v1444_v47 = vpop.xlane.xlu0 %1443 }
 0xb4b   :  { %v1447_v51 = vsub.f32 %v4023_v33, %v1445_v46  ;;  %v1446_v43 = vmul.f32 0.03125, %v1444_v47 }
 0xb4d   :  { %v1448_v49 = vsub.f32 %v4026_v36, %v1446_v43  ;;  %v1449_v40 = vmul.f32 %v1447_v51, %v1447_v51 }
 0xb4f   :  { %v1451_v54 = vsel %vm118_vm0, %v1449_v40, 0.0  ;;  %v1450_v50 = vmul.f32 %v1448_v49, %v1448_v49 }
 0xb50   :  { %1452 = vadd.xlane.f32.xlu1 %v1451_v54 }
 0xb51   :  { %v1454_v53 = vsel %vm118_vm0, %v1450_v50, 0.0 }
 0xb52   :  { %1455 = vadd.xlane.f32.xlu0 %v1454_v53 }
 0xbdd   :  { %v1453_v57 = vpop.xlane.xlu1 %1452 }
 0xbde   :  { %v1457_v58 = vmul.f32 0.03125, %v1453_v57 }
 0xbdf   :  { %v1456_v1 = vpop.xlane.xlu0 %1455 }
 0xbe0   :  { %v1459_v59 = vadd.f32 1e-06, %v1457_v58  ;;  %v1458_v60 = vmul.f32 0.03125, %v1456_v1 }
 0xbe2   :  { %3390 = vrsqrt.f32 %v1459_v59  ;;  %v1460_v61 = vadd.f32 1e-06, %v1458_v60 }
 0xbe4   :  { %3392 = vrsqrt.f32 %v1460_v61 }
 0xbec   :  { %v3391_v62 = vpop.eup %3390 }
 0xbed   :  { %v1463_v2 = vmul.f32 %v3391_v62, %v1447_v51 }
 0xbee   :  { %v3393_v3 = vpop.eup %3392 }
 0xbef   :  { %v1471_v4 = vmul.f32 %v2863_v63, %v1463_v2  ;;  %v1464_v5 = vmul.f32 %v3393_v3, %v1448_v49 }
 0xbf1   :  { %v1472_v7 = vmul.f32 %v2863_v63, %v1464_v5  ;;  %v1479_v8 = vadd.f32 %v2864_v6, %v1471_v4 }
 0xbf3   :  { %v1480_v9 = vadd.f32 %v2864_v6, %v1472_v7 }
 0xbf5   :  { %v1481_v10 = vpack.c.bf16 %v1480_v9, %v1479_v8 }
 0xbf7   :  { %3156 = vmatmul.mubr.msk.bf16.vlgmr.msra.gmra.mrb[36].mxu0 %vm118_vm0, %v1481_v10 }
 0xbf8   :  { %3161 = vmatprep.mubr.msk.bf16.mxu0 %vm3536_vm1, %v3535_v15 }
 0xcca   :  { %v1544_v12 = vpop.f32.mrb[36].mxu0 }
 0xccb   :  { %v1545_v13 = vadd.f32 %v2870_v11, %v1544_v12  ;;  %v3157_v14 = vpop.f32.mrb[37].mxu0 }
 0xccc   :  { %v1547_v17 = vpop.f32.mrb[38].mxu0 }
 0xccd   :  { %1559 = vrot.lane.b32.xlu0 %v1545_v13, %s3537_s28  ;;  %1553 = vrot.lane.b32.xlu1 %v1545_v13, %s3538_s29  ;;  %v3158_v19 = vpop.f32.mrb[39].mxu0  ;;  %v1548_v20 = vadd.f32 %v2870_v11, %v1547_v17  ;;  %v1571_v52 = vpack.c.bf16 %v1545_v13, %v1545_v13 }
 0xccf   :  { %v4073_v22 = vpack.c.bf16 %v1548_v20, %v1548_v20 }
 0xcd1   :  { %1565 = vrot.lane.b32.xlu1 %v1545_v13, %s3539_s30  ;;  %1567 = vrot.lane.b32.xlu0 %v1548_v20, %s3539_s30 }
 0xcd5   :  { %1555 = vrot.lane.b32.xlu1 %v1548_v20, %s3538_s29 }
 0xcd9   :  { %1561 = vrot.lane.b32.xlu1 %v1548_v20, %s3537_s28 }
 0xcdd   :  { %1580 = vrot.lane.b32.xlu1 %v1571_v52, %s3540_s25 }
 0xd3f   :  { %v1560_v56 = vpop.permute.xlu0 %1559  ;;  %v1554_v45 = vpop.permute.xlu1 %1553 }
 0xd40   :  { %v4063_v41 = vpack.c.bf16 %v1560_v56, %v1560_v56  ;;  %v4065_v44 = vpack.c.bf16 %v1554_v45, %v1554_v45 }
 0xd42   :  { %1629 = vrot.lane.b32.xlu0 %v4065_v44, %s3540_s25  ;;  %1678 = vrot.lane.b32.xlu1 %v4063_v41, %s3540_s25 }
 0xd43   :  { %v1566_v18 = vpop.permute.xlu1 %1565  ;;  %v1568_v25 = vpop.permute.xlu0 %1567 }
 0xd44   :  { %v4071_v21 = vpack.c.bf16 %v1566_v18, %v1566_v18  ;;  %v4083_v29 = vpack.c.bf16 %v1568_v25, %v1568_v25 }
 0xd46   :  { %1727 = vrot.lane.b32.xlu0 %v4071_v21, %s3540_s25  ;;  %1776 = vrot.lane.b32.xlu1 %v4073_v22, %s3540_s25 }
 0xd47   :  { %v1556_v23 = vpop.permute.xlu1 %1555 }
 0xd48   :  { %v4079_v24 = vpack.c.bf16 %v1556_v23, %v1556_v23 }
 0xd4a   :  { %1825 = vrot.lane.b32.xlu0 %v4079_v24, %s3540_s25 }
 0xd4b   :  { %v1562_v28 = vpop.permute.xlu1 %1561 }
 0xd4c   :  { %v4085_v30 = vpack.c.bf16 %v1562_v28, %v1562_v28 }
 0xd4e   :  { %1923 = vrot.lane.b32.xlu0 %v4083_v29, %s3540_s25  ;;  %1874 = vrot.lane.b32.xlu1 %v4085_v30, %s3540_s25 }
 0xd4f   :  { %v1581_v31 = vpop.permute.xlu1 %1580 }
 0xd50   :  { %v1586_v48 = vsel %vm261_vm2, %v1581_v31, 0 }
 0xd51   :  { %3160 = vmatpush3.bf16.xpose.msra.mxu0 %v1586_v48 }
 0xd52   :  { %2067 = vrot.lane.b32.xlu1 %v1571_v52, %s3542_s1  ;;  %3171 = vmatprep.subr.bf16.mxu0 %v3535_v15 }
 0xd58   :  { %3162 = vmatmul.mubr.msk.bf16.vlgmr.msra.gmra.mrb[40].mxu0 %vm261_vm2, %v1571_v52 }
 0xd59   :  { %3173 = vmatprep.mubr.msk.bf16.mxu0 %vm3536_vm1, %v3535_v15 }
 0xdb4   :  { %v1630_v26 = vpop.permute.xlu0 %1629  ;;  %v1679_v27 = vpop.permute.xlu1 %1678 }
 0xdb5   :  { %v1635_v32 = vsel %vm261_vm2, %v1630_v26, 0  ;;  %v1684_v34 = vsel %vm261_vm2, %v1679_v27, 0 }
 0xdb6   :  { %3166 = vmatpush3.bf16.xpose.msra.mxu1 %v1635_v32  ;;  %3172 = vmatpush3.bf16.xpose.msra.mxu0 %v1684_v34 }
 0xdb7   :  { %3177 = vmatprep.subr.bf16.mxu1 %v3535_v15  ;;  %3183 = vmatprep.subr.bf16.mxu0 %v3535_v15 }
 0xdb8   :  { %v1728_v35 = vpop.permute.xlu0 %1727  ;;  %v1777_v38 = vpop.permute.xlu1 %1776 }
 0xdb9   :  { %v1733_v39 = vsel %vm261_vm2, %v1728_v35, 0  ;;  %v1782_v42 = vsel %vm261_vm2, %v1777_v38, 0 }
 0xdbc   :  { %v1826_v46 = vpop.permute.xlu0 %1825 }
 0xdbd   :  { %3168 = vmatmul.mubr.msk.bf16.vlgmr.msra.gmra.mrb[44].mxu1 %vm261_vm2, %v4065_v44  ;;  %3174 = vmatmul.mubr.msk.bf16.vlgmr.msra.gmra.mrb[44].mxu0 %vm261_vm2, %v4063_v41  ;;  %v1831_v51 = vsel %vm261_vm2, %v1826_v46, 0 }
 0xdbe   :  { %3178 = vmatpush3.bf16.xpose.msra.mxu1 %v1733_v39  ;;  %3184 = vmatpush3.bf16.xpose.msra.mxu0 %v1782_v42 }
 0xdbf   :  { %3179 = vmatprep.mubr.msk.bf16.mxu1 %vm3536_vm1, %v3535_v15  ;;  %3185 = vmatprep.mubr.msk.bf16.mxu0 %vm3536_vm1, %v3535_v15 }
 0xdc0   :  { %3189 = vmatprep.subr.bf16.mxu1 %v3535_v15  ;;  %3195 = vmatprep.subr.bf16.mxu0 %v3535_v15  ;;  %v1875_v47 = vpop.permute.xlu1 %1874  ;;  %v1924_v49 = vpop.permute.xlu0 %1923 }
 0xdc1   :  { %v1880_v43 = vsel %vm261_vm2, %v1875_v47, 0  ;;  %v1929_v54 = vsel %vm261_vm2, %v1924_v49, 0 }
 0xdc4   :  { %v2068_v40 = vpop.permute.xlu1 %2067 }
 0xdc5   :  { %3180 = vmatmul.mubr.msk.bf16.vlgmr.msra.gmra.mrb[48].mxu1 %vm261_vm2, %v4071_v21  ;;  %3186 = vmatmul.mubr.msk.bf16.vlgmr.msra.gmra.mrb[48].mxu0 %vm261_vm2, %v4073_v22  ;;  %v2073_v50 = vsel %vm752_vm5, %v2068_v40, 0 }
 0xdc6   :  { %3190 = vmatpush3.bf16.xpose.msra.mxu1 %v1831_v51  ;;  %3196 = vmatpush3.bf16.xpose.msra.mxu0 %v1880_v43 }
 0xdc7   :  { %3191 = vmatprep.mubr.msk.bf16.mxu1 %vm3536_vm1, %v3535_v15  ;;  %3197 = vmatprep.mubr.msk.bf16.mxu0 %vm3536_vm1, %v3535_v15 }
 0xdc8   :  { %3201 = vmatprep.subr.bf16.mxu1 %v3535_v15  ;;  %3207 = vmatprep.subr.bf16.mxu0 %v3535_v15 }
 0xdcd   :  { %3192 = vmatmul.mubr.msk.bf16.vlgmr.msra.gmra.mrb[52].mxu1 %vm261_vm2, %v4079_v24  ;;  %3198 = vmatmul.mubr.msk.bf16.vlgmr.msra.gmra.mrb[52].mxu0 %vm261_vm2, %v4085_v30 }
 0xdce   :  { %3202 = vmatpush3.bf16.xpose.msra.mxu1 %v1929_v54  ;;  %3208 = vmatpush3.bf16.msra.mxu0 %v2073_v50 }
 0xdcf   :  { %3203 = vmatprep.mubr.msk.bf16.mxu1 %vm3536_vm1, %v3535_v15  ;;  %3213 = vmatprep.subr.bf16.mxu1 %v3535_v15 }
 0xdd0   :  { %3209 = vmatprep.mubr.msk.bf16.mxu0 %vm3536_vm1, %v3535_v15  ;;  %3219 = vmatprep.subr.bf16.mxu0 %v3535_v15 }
 0xdd5   :  { %3204 = vmatmul.mubr.msk.bf16.vlgmr.msra.gmra.mrb[56].mxu1 %vm261_vm2, %v4083_v29 }
 0xdd6   :  { %3215 = vmatprep.mubr.msk.bf16.mxu1 %vm3536_vm1, %v3535_v15 }
 0xe2b   :  { %v1622_v53 = vpop.f32.mrb[40].mxu0 }
 0xe2c   :  { %v1623_v55 = vadd.f32 %v1622_v53, %v3802_v16  ;;  %v3163_v0 = vpop.f32.mrb[41].mxu0 }
 0xe2d   :  { %v1625_v57 = vpop.f32.mrb[42].mxu0 }
 0xe2e   :  { %v3164_v58 = vpop.f32.mrb[43].mxu0  ;;  %v1971_v1 = vsel %vm261_vm2, %v1623_v55, -inf }
 0xe2f   :  { %1972 = vmax.xlane.f32.xlu1 %v1971_v1 }
 0xe90   :  { %v1671_v59 = vpop.f32.mrb[44].mxu1  ;;  %v1720_v60 = vpop.f32.mrb[44].mxu0 }
 0xe91   :  { %v1672_v61 = vadd.f32 %v1671_v59, %v3802_v16  ;;  %v3169_v62 = vpop.f32.mrb[45].mxu1  ;;  %v3175_v63 = vpop.f32.mrb[45].mxu0  ;;  %v1721_v4 = vadd.f32 %v1720_v60, %v3802_v16 }
 0xe92   :  { %v1674_v2 = vpop.f32.mrb[46].mxu1  ;;  %v1723_v3 = vpop.f32.mrb[46].mxu0 }
 0xe93   :  { %v3170_v5 = vpop.f32.mrb[47].mxu1  ;;  %v3176_v6 = vpop.f32.mrb[47].mxu0  ;;  %v1974_v7 = vsel %vm261_vm2, %v1672_v61, -inf  ;;  %v1977_v8 = vsel %vm261_vm2, %v1721_v4, -inf }
 0xe94   :  { %1975 = vmax.xlane.f32.xlu0 %v1974_v7 }
 0xe98   :  { %v1818_v9 = vpop.f32.mrb[48].mxu0  ;;  %1978 = vmax.xlane.f32.xlu0 %v1977_v8  ;;  %v1769_v10 = vpop.f32.mrb[48].mxu1 }
 0xe99   :  { %v1819_v11 = vadd.f32 %v1818_v9, %v3819_v37  ;;  %v1770_v12 = vadd.f32 %v1769_v10, %v3802_v16  ;;  %v3181_v13 = vpop.f32.mrb[49].mxu1  ;;  %v3187_v14 = vpop.f32.mrb[49].mxu0 }
 0xe9a   :  { %v1772_v17 = vpop.f32.mrb[50].mxu1  ;;  %v1821_v19 = vpop.f32.mrb[50].mxu0 }
 0xe9b   :  { %v3182_v20 = vpop.f32.mrb[51].mxu1  ;;  %v3188_v52 = vpop.f32.mrb[51].mxu0  ;;  %v1983_v56 = vsel %vm261_vm2, %v1819_v11, -inf  ;;  %v1980_v45 = vsel %vm261_vm2, %v1770_v12, -inf }
 0xe9c   :  { %1984 = vmax.xlane.f32.xlu1 %v1983_v56  ;;  %1981 = vmax.xlane.f32.xlu0 %v1980_v45 }
 0xea0   :  { %v1867_v18 = vpop.f32.mrb[52].mxu1  ;;  %v1916_v23 = vpop.f32.mrb[52].mxu0 }
 0xea1   :  { %v4152_v25 = vadd.f32 %v1867_v18, %v3819_v37  ;;  %v1917_v28 = vadd.f32 %v1916_v23, %v3819_v37  ;;  %v3193_v16 = vpop.f32.mrb[53].mxu1  ;;  %v3199_v31 = vpop.f32.mrb[53].mxu0 }
 0xea2   :  { %v1870_v48 = vpop.f32.mrb[54].mxu1  ;;  %v1919_v26 = vpop.f32.mrb[54].mxu0 }
 0xea3   :  { %v3194_v27 = vpop.f32.mrb[55].mxu1  ;;  %v3200_v32 = vpop.f32.mrb[55].mxu0  ;;  %v1989_v34 = vsel %vm261_vm2, %v1917_v28, -inf  ;;  %v1986_v35 = vsel %vm261_vm2, %v4152_v25, -inf }
 0xea4   :  { %1990 = vmax.xlane.f32.xlu1 %v1989_v34  ;;  %1987 = vmax.xlane.f32.xlu0 %v1986_v35 }
 0xea8   :  { %v1965_v38 = vpop.f32.mrb[56].mxu1 }
 0xea9   :  { %v4159_v39 = vadd.f32 %v1965_v38, %v3819_v37  ;;  %v3205_v42 = vpop.f32.mrb[57].mxu1 }
 0xeaa   :  { %v1968_v46 = vpop.f32.mrb[58].mxu1 }
 0xeab   :  { %v3206_v47 = vpop.f32.mrb[59].mxu1  ;;  %v1992_v51 = vsel %vm261_vm2, %v4159_v39, -inf }
 0xeac   :  { %1993 = vmax.xlane.f32.xlu0 %v1992_v51 }
 0xeb5   :  { %2163 = vrot.lane.b32.xlu1 %v4063_v41, %s3542_s1 }
 0xeb9   :  { %2211 = vrot.lane.b32.xlu1 %v4071_v21, %s3542_s1 }
 0xebc   :  { %v1973_v43 = vpop.xlane.xlu1 %1972 }
 0xebd   :  { %v1995_v49 = vsub.f32 %v1623_v55, %v1973_v43 }
 0xebf   :  { %v2003_v37 = vmul.f32 1.442695, %v1995_v49 }
 0xec1   :  { %3394 = vpow2.f32 %v2003_v37 }
 0xec2   :  { %2115 = vrot.lane.b32.xlu0 %v4065_v44, %s3542_s1 }
 0xecb   :  { %v4169_v40 = vpop.eup %3394 }
 0xecc   :  { %v2019_v54 = vsel %vm261_vm2, %v4169_v40, 0.0 }
 0xedd   :  { %2020 = vadd.xlane.f32.xlu1 %v2019_v54 }
 0xeee   :  { %2259 = vrot.lane.b32.xlu1 %v4073_v22, %s3542_s1 }
 0xf21   :  { %v1976_v41 = vpop.xlane.xlu0 %1975 }
 0xf22   :  { %v1996_v50 = vsub.f32 %v1672_v61, %v1976_v41 }
 0xf24   :  { %v2005_v53 = vmul.f32 1.442695, %v1996_v50 }
 0xf25   :  { %v1979_v21 = vpop.xlane.xlu0 %1978 }
 0xf26   :  { %3396 = vpow2.f32 %v2005_v53  ;;  %v1997_v0 = vsub.f32 %v1721_v4, %v1979_v21 }
 0xf28   :  { %v2007_v44 = vmul.f32 1.442695, %v1997_v0 }
 0xf29   :  { %v1985_v57 = vpop.xlane.xlu1 %1984  ;;  %v1982_v55 = vpop.xlane.xlu0 %1981 }
 0xf2a   :  { %3398 = vpow2.f32 %v2007_v44  ;;  %v1999_v58 = vsub.f32 %v1819_v11, %v1985_v57  ;;  %v1998_v1 = vsub.f32 %v1770_v12, %v1982_v55 }
 0xf2c   :  { %v2011_v59 = vmul.f32 1.442695, %v1999_v58  ;;  %v2009_v60 = vmul.f32 1.442695, %v1998_v1 }
 0xf2e   :  { %3400 = vpow2.f32 %v2011_v59 }
 0xf2f   :  { %3402 = vpow2.f32 %v2009_v60 }
 0xf30   :  { %v3397_v62 = vpop.eup %3396 }
 0xf31   :  { %v1991_v63 = vpop.xlane.xlu1 %1990  ;;  %v2022_v22 = vsel %vm261_vm2, %v3397_v62, 0.0  ;;  %v1988_v5 = vpop.xlane.xlu0 %1987 }
 0xf32   :  { %v2001_v2 = vsub.f32 %v1917_v28, %v1991_v63  ;;  %2023 = vadd.xlane.f32.xlu0 %v2022_v22  ;;  %v2000_v17 = vsub.f32 %v4152_v25, %v1988_v5 }
 0xf34   :  { %v3399_v61 = vpop.eup %3398  ;;  %v2015_v3 = vmul.f32 1.442695, %v2001_v2  ;;  %v2013_v19 = vmul.f32 1.442695, %v2000_v17 }
 0xf35   :  { %v2025_v4 = vsel %vm261_vm2, %v3399_v61, 0.0  ;;  %v2164_v52 = vpop.permute.xlu1 %2163 }
 0xf36   :  { %3404 = vpow2.f32 %v2015_v3  ;;  %2026 = vadd.xlane.f32.xlu1 %v2025_v4  ;;  %v2169_v48 = vsel %vm752_vm5, %v2164_v52, 0 }
 0xf37   :  { %3406 = vpow2.f32 %v2013_v19 }
 0xf38   :  { %v4177_v6 = vpop.eup %3400 }
 0xf39   :  { %v4179_v7 = vpop.eup %3402  ;;  %v1994_v8 = vpop.xlane.xlu0 %1993  ;;  %v2031_v9 = vsel %vm261_vm2, %v4177_v6, 0.0 }
 0xf3a   :  { %2032 = vadd.xlane.f32.xlu1 %v2031_v9  ;;  %v2028_v10 = vsel %vm261_vm2, %v4179_v7, 0.0  ;;  %v2002_v20 = vsub.f32 %v4159_v39, %v1994_v8  ;;  %v2212_v45 = vpop.permute.xlu1 %2211 }
 0xf3b   :  { %2029 = vadd.xlane.f32.xlu0 %v2028_v10  ;;  %v2217_v47 = vsel %vm752_vm5, %v2212_v45, 0 }
 0xf3c   :  { %v2017_v56 = vmul.f32 1.442695, %v2002_v20 }
 0xf3d   :  { %v2116_v11 = vpop.permute.xlu0 %2115 }
 0xf3e   :  { %v2121_v12 = vsel %vm752_vm5, %v2116_v11, 0  ;;  %3408 = vpow2.f32 %v2017_v56 }
 0xf3f   :  { %3214 = vmatpush3.bf16.msra.mxu1 %v2121_v12 }
 0xf40   :  { %v4186_v13 = vpop.eup %3404  ;;  %3225 = vmatprep.subr.bf16.mxu1 %v3535_v15 }
 0xf41   :  { %v2037_v14 = vsel %vm261_vm2, %v4186_v13, 0.0  ;;  %v4197_v23 = vpop.eup %3406 }
 0xf42   :  { %2038 = vadd.xlane.f32.xlu1 %v2037_v14 }
 0xf48   :  { %v4201_v28 = vpop.eup %3408 }
 0xf51   :  { %2307 = vrot.lane.b32.xlu0 %v4079_v24, %s3542_s1  ;;  %v2034_v24 = vsel %vm261_vm2, %v4197_v23, 0.0 }
 0xf53   :  { %2355 = vrot.lane.b32.xlu1 %v4085_v30, %s3542_s1  ;;  %v2040_v30 = vsel %vm261_vm2, %v4201_v28, 0.0 }
 0xf6a   :  { %v2021_v18 = vpop.xlane.xlu1 %2020 }
 0xf6b   :  { %3410 = vrcp.f32 %v2021_v18 }
 0xf6e   :  { %v2260_v26 = vpop.permute.xlu1 %2259 }
 0xf70   :  { %2035 = vadd.xlane.f32.xlu0 %v2034_v24 }
 0xf74   :  { %2041 = vadd.xlane.f32.xlu0 %v2040_v30 }
 0xf75   :  { %v3411_v25 = vpop.eup %3410 }
 0xf76   :  { %v2051_v16 = vmul.f32 %v3411_v25, %v4169_v40  ;;  %v2265_v40 = vsel %vm752_vm5, %v2260_v26, 0 }
 0xf78   :  { %v2059_v31 = vpack.c.bf16 %v2051_v16, %v2051_v16 }
 0xf7a   :  { %3210 = vmatmul.mubr.msk.bf16.vlgmr.msra.gmra.mrb[56].mxu0 %vm261_vm2, %v2059_v31 }
 0xf7b   :  { %3220 = vmatpush3.bf16.msra.mxu0 %v2169_v48  ;;  %3221 = vmatprep.mubr.msk.bf16.mxu0 %vm3536_vm1, %v3535_v15 }
 0xf7c   :  { %3231 = vmatprep.subr.bf16.mxu0 %v3535_v15 }
 0xf8a   :  { %2403 = vrot.lane.b32.xlu0 %v4083_v29, %s3542_s1 }
 0xfbf   :  { %v2024_v27 = vpop.xlane.xlu0 %2023 }
 0xfc0   :  { %3412 = vrcp.f32 %v2024_v27  ;;  %v3342_v27 = vld [vmem:[%s4351_s6 + $0x10] sm:$0xff]  }
 0xfc3   :  { %v2027_v32 = vpop.xlane.xlu1 %2026 }
 0xfc4   :  { %3414 = vrcp.f32 %v2027_v32  ;;  %v3343_v32 = vld [vmem:[%s4351_s6 + $0x18] sm:$0xff]  }
 0xfc7   :  { %v2033_v34 = vpop.xlane.xlu1 %2032 }
 0xfc8   :  { %3416 = vrcp.f32 %v2033_v34  ;;  %v2030_v35 = vpop.xlane.xlu0 %2029 }
 0xfc9   :  { %3418 = vrcp.f32 %v2030_v35 }
 0xfca   :  { %v3413_v38 = vpop.eup %3412 }
 0xfcb   :  { %v2052_v39 = vmul.f32 %v3413_v38, %v3397_v62 }
 0xfcc   :  { %v2308_v50 = vpop.permute.xlu0 %2307 }
 0xfcd   :  { %v2060_v42 = vpack.c.bf16 %v2052_v39, %v2052_v39  ;;  %v2313_v21 = vsel %vm752_vm5, %v2308_v50, 0 }
 0xfce   :  { %v3415_v46 = vpop.eup %3414 }
 0xfcf   :  { %v2053_v51 = vmul.f32 %v3415_v46, %v3399_v61  ;;  %v2039_v43 = vpop.xlane.xlu1 %2038  ;;  %3216 = vmatmul.mubr.msk.bf16.vlgmr.msra.gmra.mrb[60].mxu1 %vm261_vm2, %v2060_v42 }
 0xfd0   :  { %3420 = vrcp.f32 %v2039_v43  ;;  %3226 = vmatpush3.bf16.msra.mxu1 %v2217_v47  ;;  %3227 = vmatprep.mubr.msk.bf16.mxu1 %vm3536_vm1, %v3535_v15 }
 0xfd1   :  { %v2061_v29 = vpack.c.bf16 %v2053_v51, %v2053_v51  ;;  %3237 = vmatprep.subr.bf16.mxu1 %v3535_v15 }
 0xfd2   :  { %v3417_v49 = vpop.eup %3416 }
 0xfd3   :  { %v3419_v37 = vpop.eup %3418  ;;  %3222 = vmatmul.mubr.msk.bf16.vlgmr.msra.gmra.mrb[60].mxu0 %vm261_vm2, %v2061_v29  ;;  %v2055_v41 = vmul.f32 %v3417_v49, %v4177_v6  ;;  %v2356_v0 = vpop.permute.xlu1 %2355 }
 0xfd4   :  { %v2054_v54 = vmul.f32 %v3419_v37, %v4179_v7  ;;  %3232 = vmatpush3.bf16.msra.mxu0 %v2265_v40  ;;  %3233 = vmatprep.mubr.msk.bf16.mxu0 %vm3536_vm1, %v3535_v15  ;;  %v2361_v55 = vsel %vm752_vm5, %v2356_v0, 0 }
 0xfd5   :  { %3243 = vmatprep.subr.bf16.mxu0 %v3535_v15  ;;  %v2063_v44 = vpack.c.bf16 %v2055_v41, %v2055_v41 }
 0xfd6   :  { %v2062_v53 = vpack.c.bf16 %v2054_v54, %v2054_v54 }
 0xfd8   :  { %3228 = vmatmul.mubr.msk.bf16.vlgmr.msra.gmra.mrb[64].mxu1 %vm261_vm2, %v2062_v53 }
 0xfd9   :  { %3238 = vmatpush3.bf16.msra.mxu1 %v2313_v21  ;;  %3239 = vmatprep.mubr.msk.bf16.mxu1 %vm3536_vm1, %v3535_v15 }
 0xfda   :  { %v3421_v57 = vpop.eup %3420  ;;  %3249 = vmatprep.subr.bf16.mxu1 %v3535_v15 }
 0xfdb   :  { %3234 = vmatmul.mubr.msk.bf16.vlgmr.msra.gmra.mrb[64].mxu0 %vm261_vm2, %v2063_v44  ;;  %v2057_v58 = vmul.f32 %v3421_v57, %v4186_v13 }
 0xfdc   :  { %3244 = vmatpush3.bf16.msra.mxu0 %v2361_v55  ;;  %3245 = vmatprep.mubr.msk.bf16.mxu0 %vm3536_vm1, %v3535_v15 }
 0xfdd   :  { %3255 = vmatprep.subr.bf16.mxu0 %v3535_v15  ;;  %v2065_v1 = vpack.c.bf16 %v2057_v58, %v2057_v58 }
 0xfe3   :  { %3246 = vmatmul.mubr.msk.bf16.vlgmr.msra.gmra.mrb[68].mxu0 %vm261_vm2, %v2065_v1 }
 0xfe4   :  { %3259 = vmatprep.mubr.msk.bf16.mxu0 %vm3536_vm1, %v3535_v15  ;;  %3256 = vmatpush3.bf16.msra.mxu0 %v3342_v27 }
 0xfe5   :  { %3257 = vmatprep.subr.bf16.mxu0 %v3535_v15 }
 0xfe8   :  { %3258 = vmatpush3.bf16.msra.mxu0 %v3343_v32 }
 0xfe9   :  { %3271 = vmatprep.subr.bf16.mxu0 %v3535_v15 }
 0xffd   :  { %v2036_v59 = vpop.xlane.xlu0 %2035 }
 0xffe   :  { %3422 = vrcp.f32 %v2036_v59 }
0x1001   :  { %v2042_v60 = vpop.xlane.xlu0 %2041 }
0x1002   :  { %3424 = vrcp.f32 %v2042_v60 }
0x1005   :  { %v2404_v22 = vpop.permute.xlu0 %2403 }
0x1006   :  { %v2409_v3 = vsel %vm752_vm5, %v2404_v22, 0 }
0x1008   :  { %v3423_v62 = vpop.eup %3422 }
0x1009   :  { %v2056_v63 = vmul.f32 %v3423_v62, %v4197_v23  ;;  %v2895_v62 = vld [vmem:[%s4352_s7 + $0x1] ss:$0 sm:$0xff] }
0x100b   :  { %v2064_v2 = vpack.c.bf16 %v2056_v63, %v2056_v63 }
0x100c   :  { %v3425_v61 = vpop.eup %3424 }
0x100d   :  { %3240 = vmatmul.mubr.msk.bf16.vlgmr.msra.gmra.mrb[68].mxu1 %vm261_vm2, %v2064_v2  ;;  %v2058_v5 = vmul.f32 %v3425_v61, %v4201_v28 }
0x100e   :  { %3250 = vmatpush3.bf16.msra.mxu1 %v2409_v3  ;;  %3251 = vmatprep.mubr.msk.bf16.mxu1 %vm3536_vm1, %v3535_v15 }
0x100f   :  { %3263 = vmatprep.subr.bf16.mxu1 %v3535_v15  ;;  %v2066_v4 = vpack.c.bf16 %v2058_v5, %v2058_v5 }
0x1015   :  { %3252 = vmatmul.mubr.msk.bf16.vlgmr.msra.gmra.mrb[72].mxu1 %vm261_vm2, %v2066_v4 }
0x1016   :  { %3267 = vmatprep.mubr.msk.bf16.mxu1 %vm3536_vm1, %v3535_v15 }
0x104d   :  { %v2109_v6 = vpop.f32.mrb[56].mxu0 }
0x104e   :  { %v3211_v7 = vpop.f32.mrb[57].mxu0 }
0x104f   :  { %v2112_v8 = vpop.f32.mrb[58].mxu0 }
0x1050   :  { %v3212_v9 = vpop.f32.mrb[59].mxu0 }
0x10a2   :  { %v2157_v10 = vpop.f32.mrb[60].mxu1 }
0x10a3   :  { %v3217_v11 = vpop.f32.mrb[61].mxu1 }
0x10a4   :  { %v2160_v12 = vpop.f32.mrb[62].mxu1 }
0x10a5   :  { %v3218_v13 = vpop.f32.mrb[63].mxu1 }
0x10a6   :  { %v2205_v14 = vpop.f32.mrb[60].mxu0 }
0x10a7   :  { %v3223_v17 = vpop.f32.mrb[61].mxu0 }
0x10a8   :  { %v2208_v19 = vpop.f32.mrb[62].mxu0 }
0x10a9   :  { %v3224_v20 = vpop.f32.mrb[63].mxu0 }
0x10aa   :  { %v3344_v20 = vld [vmem:[%s4355_s10 + $0x10] sm:$0xff]  }
0x10ab   :  { %v2253_v52 = vpop.f32.mrb[64].mxu1  ;;  %3264 = vmatpush3.bf16.msra.mxu1 %v3344_v20  ;;  %v2926_v20 = vld [vmem:[%s4360_s15] ss:$0 sm:$0xff] }
0x10ac   :  { %v3229_v56 = vpop.f32.mrb[65].mxu1  ;;  %3265 = vmatprep.subr.bf16.mxu1 %v3535_v15 }
0x10ad   :  { %v2256_v45 = vpop.f32.mrb[66].mxu1  ;;  %v3346_v56 = vld [vmem:[%s4357_s12 + $0x20] sm:$0xff]  }
0x10ae   :  { %v3230_v18 = vpop.f32.mrb[67].mxu1  ;;  %v2301_v23 = vpop.f32.mrb[64].mxu0  ;;  %v3347_v45 = vld [vmem:[%s4357_s12 + $0x28] sm:$0xff]  }
0x10af   :  { %v3235_v24 = vpop.f32.mrb[65].mxu0 }
0x10b0   :  { %v2304_v28 = vpop.f32.mrb[66].mxu0 }
0x10b1   :  { %v3236_v30 = vpop.f32.mrb[67].mxu0 }
0x10b6   :  { %v2397_v25 = vpop.f32.mrb[68].mxu0 }
0x10b7   :  { %v3320_v16 = vpack.i.bf16 %v2397_v25, %v2205_v14  ;;  %v3247_v31 = vpop.f32.mrb[69].mxu0 }
0x10b8   :  { %v2400_v48 = vpop.f32.mrb[70].mxu0 }
0x10b9   :  { %v3248_v26 = vpop.f32.mrb[71].mxu0  ;;  %3321 = vrot.lane.b32.xlu0 %v3320_v16, %s4369_s21  ;;  %v2900_v48 = vld [vmem:[%s4353_s8 + $0x1] ss:$0 sm:$0xff] }
0x10e0   :  { %v2349_v34 = vpop.f32.mrb[68].mxu1 }
0x10e1   :  { %v3315_v35 = vpack.i.bf16 %v2349_v34, %v2157_v10  ;;  %v3241_v38 = vpop.f32.mrb[69].mxu1  ;;  %v2901_v34 = vld [vmem:[#allocation5 + $0x1] ss:$0 sm:$0xff] }
0x10e2   :  { %v2352_v39 = vpop.f32.mrb[70].mxu1 }
0x10e3   :  { %3316 = vrot.lane.b32.xlu1 %v3315_v35, %s3533_s22  ;;  %v3242_v42 = vpop.f32.mrb[71].mxu1 }
0x10e8   :  { %v2445_v46 = vpop.f32.mrb[72].mxu1 }
0x10e9   :  { %v3325_v47 = vpack.i.bf16 %v2445_v46, %v2253_v52  ;;  %v3253_v51 = vpop.f32.mrb[73].mxu1  ;;  %v3345_v52 = vld [vmem:[%s4355_s10 + $0x18] sm:$0xff]   ;;  %v3348_v46 = vld [vmem:[%s4357_s12 + $0x30] sm:$0xff]  }
0x10ea   :  { %v2448_v43 = vpop.f32.mrb[74].mxu1  ;;  %3266 = vmatpush3.bf16.msra.mxu1 %v3345_v52  ;;  %v2906_v51 = vld [vmem:[#allocation7 + $0x1] ss:$0 sm:$0xff] }
0x10eb   :  { %3326 = vrot.lane.b32.xlu1 %v3325_v47, %s3543_s26  ;;  %v3254_v29 = vpop.f32.mrb[75].mxu1  ;;  %v3349_v47 = vld [vmem:[%s4357_s12 + $0x38] sm:$0xff]  }
0x112b   :  { %v3322_v54 = vpop.permute.xlu0 %3321 }
0x112c   :  { %v3324_v53 = vunpack.i.h.bf16 %v3322_v54  ;;  %v3323_v21 = vunpack.i.l.bf16 %v3322_v54 }
0x1155   :  { %v3317_v49 = vpop.permute.xlu1 %3316 }
0x1156   :  { %v3319_v37 = vunpack.i.h.bf16 %v3317_v49  ;;  %v3318_v40 = vunpack.i.l.bf16 %v3317_v49 }
0x1158   :  { %v2476_v41 = vsel %vm261_vm2, %v2301_v23, %v3319_v37  ;;  %v2475_v50 = vsel %vm261_vm2, %v2109_v6, %v3318_v40 }
0x1159   :  { %v2477_v55 = vsel %vm1158_vm6, %v2475_v50, %v3323_v21  ;;  %v2478_v58 = vsel %vm1158_vm6, %v2476_v41, %v3324_v53 }
0x115d   :  { %v3327_v0 = vpop.permute.xlu1 %3326 }
0x115e   :  { %v3329_v44 = vunpack.i.h.bf16 %v3327_v0  ;;  %v3328_v57 = vunpack.i.l.bf16 %v3327_v0 }
0x1160   :  { %v2480_v1 = vsel %vm1161_vm7, %v2478_v58, %v3329_v44  ;;  %v2479_v59 = vsel %vm1161_vm7, %v2477_v55, %v3328_v57 }
0x1161   :  { %v2481_v60 = vpack.c.bf16 %v2480_v1, %v2479_v59 }
0x1163   :  { %3260 = vmatmul.mubr.msk.bf16.vlgmr.msra.gmra.mrb[72].mxu0 %vm118_vm0, %v2481_v60 }
0x1164   :  { %3279 = vmatprep.mubr.msk.bf16.mxu0 %vm3536_vm1, %v3535_v15  ;;  %3272 = vmatpush3.bf16.msra.mxu0 %v3346_v56 }
0x1165   :  { %3273 = vmatprep.subr.bf16.mxu0 %v3535_v15 }
0x1168   :  { %3274 = vmatpush3.bf16.msra.mxu0 %v3347_v45 }
0x1169   :  { %3275 = vmatprep.subr.bf16.mxu0 %v3535_v15 }
0x116c   :  { %3276 = vmatpush3.bf16.msra.mxu0 %v3348_v46 }
0x116d   :  { %3277 = vmatprep.subr.bf16.mxu0 %v3535_v15  ;;  %v2919_v15 = vld [vmem:[%s4358_s13 + $0x1] ss:$0 sm:$0xff] }
0x1170   :  { %3278 = vmatpush3.bf16.msra.mxu0 %v3349_v47 }
0x1236   :  { %v2544_v63 = vpop.f32.mrb[72].mxu0 }
0x1237   :  { %v2545_v22 = vadd.f32 %v2895_v62, %v2544_v63  ;;  %v3261_v2 = vpop.f32.mrb[73].mxu0 }
0x1238   :  { %v2547_v61 = vpop.f32.mrb[74].mxu0 }
0x1239   :  { %v4273_v3 = vadd.f32 %v2545_v22, %v4023_v33  ;;  %v2548_v5 = vadd.f32 %v2895_v62, %v2547_v61  ;;  %v3262_v4 = vpop.f32.mrb[75].mxu0 }
0x123b   :  { %v4276_v6 = vadd.f32 %v2548_v5, %v4026_v36  ;;  %v2557_v7 = vsel %vm118_vm0, %v4273_v3, 0.0 }
0x123c   :  { %2558 = vadd.xlane.f32.xlu0 %v2557_v7 }
0x123d   :  { %v2560_v8 = vsel %vm118_vm0, %v4276_v6, 0.0 }
0x123e   :  { %2561 = vadd.xlane.f32.xlu1 %v2560_v8 }
0x12c9   :  { %v2559_v9 = vpop.xlane.xlu0 %2558 }
0x12ca   :  { %v2563_v10 = vmul.f32 0.03125, %v2559_v9 }
0x12cb   :  { %v2562_v11 = vpop.xlane.xlu1 %2561 }
0x12cc   :  { %v2565_v12 = vsub.f32 %v4273_v3, %v2563_v10  ;;  %v2564_v33 = vmul.f32 0.03125, %v2562_v11 }
0x12ce   :  { %v2566_v13 = vsub.f32 %v4276_v6, %v2564_v33  ;;  %v2567_v14 = vmul.f32 %v2565_v12, %v2565_v12 }
0x12d0   :  { %v2569_v36 = vsel %vm118_vm0, %v2567_v14, 0.0  ;;  %v2568_v17 = vmul.f32 %v2566_v13, %v2566_v13 }
0x12d1   :  { %2570 = vadd.xlane.f32.xlu0 %v2569_v36  ;;  %v2925_v36 = vld [vmem:[%s4359_s14] ss:$0 sm:$0xff] }
0x12d2   :  { %v2572_v19 = vsel %vm118_vm0, %v2568_v17, 0.0 }
0x12d5   :  { %2573 = vadd.xlane.f32.xlu0 %v2572_v19 }
0x135e   :  { %v2571_v18 = vpop.xlane.xlu0 %2570 }
0x135f   :  { %v2575_v23 = vmul.f32 0.03125, %v2571_v18 }
0x1361   :  { %v2577_v24 = vadd.f32 1e-06, %v2575_v23 }
0x1362   :  { %v2574_v28 = vpop.xlane.xlu0 %2573 }
0x1363   :  { %3426 = vrsqrt.f32 %v2577_v24  ;;  %v2576_v30 = vmul.f32 0.03125, %v2574_v28 }
0x1365   :  { %v2578_v25 = vadd.f32 1e-06, %v2576_v30 }
0x1367   :  { %3428 = vrsqrt.f32 %v2578_v25 }
0x136d   :  { %v3427_v16 = vpop.eup %3426 }
0x136e   :  { %v2581_v31 = vmul.f32 %v3427_v16, %v2565_v12 }
0x1370   :  { %v2589_v27 = vmul.f32 %v2900_v48, %v2581_v31 }
0x1371   :  { %v3429_v26 = vpop.eup %3428 }
0x1372   :  { %v2582_v32 = vmul.f32 %v3429_v26, %v2566_v13  ;;  %v2597_v38 = vadd.f32 %v2901_v34, %v2589_v27 }
0x1374   :  { %v2590_v35 = vmul.f32 %v2900_v48, %v2582_v32 }
0x1376   :  { %v2598_v39 = vadd.f32 %v2901_v34, %v2590_v35 }
0x1378   :  { %v2599_v42 = vpack.c.bf16 %v2598_v39, %v2597_v38 }
0x137a   :  { %3268 = vmatmul.mubr.msk.bf16.vlgmr.msra.gmra.mrb[76].mxu1 %vm118_vm0, %v2599_v42 }
0x144d   :  { %v2662_v43 = vpop.f32.mrb[76].mxu1 }
0x144e   :  { %v2663_v29 = vadd.f32 %v2906_v51, %v2662_v43  ;;  %v3269_v49 = vpop.f32.mrb[77].mxu1 }
0x144f   :  { %v2665_v37 = vpop.f32.mrb[78].mxu1 }
0x1450   :  { %v2666_v40 = vadd.f32 %v2906_v51, %v2665_v37  ;;  %v3270_v54 = vpop.f32.mrb[79].mxu1  ;;  %v2669_v41 = vmax.f32 %v2663_v29, 0.0 }
0x1452   :  { %v2670_v50 = vmax.f32 %v2666_v40, 0.0 }
0x1454   :  { %v2671_v53 = vpack.c.bf16 %v2670_v50, %v2669_v41 }
0x1456   :  { %3280 = vmatmul.mubr.msk.bf16.vlgmr.msra.gmra.mrb[76].mxu0 %vm1388_vm8, %v2671_v53 }
0x1529   :  { %v2750_v21 = vpop.f32.mrb[76].mxu0 }
0x152a   :  { %v2751_v0 = vadd.f32 %v2919_v15, %v2750_v21  ;;  %v3281_v44 = vpop.f32.mrb[77].mxu0 }
0x152b   :  { %v2753_v57 = vpop.f32.mrb[78].mxu0 }
0x152c   :  { %v2757_v55 = vadd.f32 %v2751_v0, %v4273_v3  ;;  %v2754_v58 = vadd.f32 %v2919_v15, %v2753_v57  ;;  %v3282_v1 = vpop.f32.mrb[79].mxu0 }
0x152e   :  { %v2758_v59 = vadd.f32 %v2754_v58, %v4276_v6  ;;  %v2761_v60 = vsel %vm118_vm0, %v2757_v55, 0.0 }
0x152f   :  { %2762 = vadd.xlane.f32.xlu0 %v2761_v60 }
0x1530   :  { %v2764_v62 = vsel %vm118_vm0, %v2758_v59, 0.0 }
0x1531   :  { %2765 = vadd.xlane.f32.xlu1 %v2764_v62 }
0x15bc   :  { %v2763_v63 = vpop.xlane.xlu0 %2762 }
0x15bd   :  { %v2767_v22 = vmul.f32 0.03125, %v2763_v63 }
0x15be   :  { %v2766_v2 = vpop.xlane.xlu1 %2765 }
0x15bf   :  { %v2769_v61 = vsub.f32 %v2757_v55, %v2767_v22  ;;  %v2768_v5 = vmul.f32 0.03125, %v2766_v2 }
0x15c1   :  { %v2770_v4 = vsub.f32 %v2758_v59, %v2768_v5  ;;  %v2771_v7 = vmul.f32 %v2769_v61, %v2769_v61 }
0x15c3   :  { %v2773_v8 = vsel %vm118_vm0, %v2771_v7, 0.0  ;;  %v2772_v3 = vmul.f32 %v2770_v4, %v2770_v4 }
0x15c4   :  { %2774 = vadd.xlane.f32.xlu0 %v2773_v8 }
0x15c5   :  { %v2776_v9 = vsel %vm118_vm0, %v2772_v3, 0.0 }
0x15c6   :  { %2777 = vadd.xlane.f32.xlu1 %v2776_v9 }
0x1651   :  { %v2775_v6 = vpop.xlane.xlu0 %2774 }
0x1652   :  { %v2779_v10 = vmul.f32 0.03125, %v2775_v6 }
0x1653   :  { %v2778_v11 = vpop.xlane.xlu1 %2777 }
0x1654   :  { %v2781_v12 = vadd.f32 1e-06, %v2779_v10  ;;  %v2780_v33 = vmul.f32 0.03125, %v2778_v11 }
0x1656   :  { %3430 = vrsqrt.f32 %v2781_v12  ;;  %v2782_v13 = vadd.f32 1e-06, %v2780_v33 }
0x1658   :  { %3432 = vrsqrt.f32 %v2782_v13 }
0x1660   :  { %v3431_v14 = vpop.eup %3430 }
0x1661   :  { %v2785_v17 = vmul.f32 %v3431_v14, %v2769_v61 }
0x1662   :  { %v3433_v19 = vpop.eup %3432 }
0x1663   :  { %v2786_v52 = vmul.f32 %v3433_v19, %v2770_v4  ;;  %v2793_v56 = vmul.f32 %v2925_v36, %v2785_v17 }
0x1665   :  { %v2794_v45 = vmul.f32 %v2925_v36, %v2786_v52  ;;  %v2801_v18 = vadd.f32 %v2926_v20, %v2793_v56 }
0x1667   :  { %v2802_v23 = vadd.f32 %v2926_v20, %v2794_v45  ;;  %2803 = vst.msk [vmem:[#allocation8] sm:$0xff] %vm118_vm0, %v2801_v18 }
0x1669   :  { %2804 = vst.msk [vmem:[#allocation8 + $0x8] sm:$0xff] %vm118_vm0, %v2802_v23 }
0x166a   :  { %3511 = shalt.err (!%p3508_p0)
}
0x166b   :  { %s4370_s5 = sld [smem:[#allocation13_spill]] }
0x1671   :  { %s3512_s28 = scalar_lea.hbm %s4370_s5, 256 }
0x1672   :  { %p3513_p1 = scmp.ne.s32.totalorder %s4370_s5, %s3512_s28  ;;  %p3516_p2 = scmp.lt.u32.totalorder %s3512_s28, %s4370_s5 }
0x1674   :  { %p3518_p3 = pnand %p3516_p2, %p3513_p1 }
0x1676   :  { %3521 = shalt.err (!%p3518_p3)
}
0x1677   :  { %2816 = dma.vmem_to_hbm [thread:$0]  %s2811_s2, 256, %s4370_s5, [#allocation4], %s3532_s9, %s3532_s9, %s3533_s22  }
0x1678   :  { %3526 = dma.done.wait [#allocation4], 256  }
0x1679   :  { %3527 = vsyncadd [#allocation4], 4294967040 }
0x167a   :  { %2820 = vsyncpa [#allocation3], 1 }
0x167b   :  { %2821 = vsyncpa [#allocation6], 1 }
0x167c   :  { %2822 = vsyncpa [#allocation4], 1 }

</bundles_post_ra>
